<compile_context>
chip_gen: v7x
topology: tpu7x:2x2x1
jax: 0.10.0
libtpu: 0.0.40
codegen_flags: <defaults>
</compile_context>

<pallas_src>
import functools
import math

import jax
import jax.numpy as jnp
from jax.experimental import pallas as pl
from jax.experimental.pallas import tpu as pltpu


def _round_up(x, m):
    return ((x + m - 1) // m) * m


def _maybe_pad2d(a, rows, cols):
    pr, pc = rows - a.shape[0], cols - a.shape[1]
    if pr or pc:
        a = jnp.pad(a, ((0, pr), (0, pc)))
    return a


@functools.lru_cache(maxsize=None)
def _hw_config():
    """Generation-dependent VMEM budget + matmul tile caps."""
    vmem_cap = 64 << 20
    try:
        vmem_cap = int(pltpu.get_tpu_info().vmem_capacity_bytes)
    except Exception:
        pass
    if vmem_cap >= (100 << 20):      # v5e / v6e: 128 MiB VMEM
        return {"vmem": 100 << 20, "tm": 512, "tn": 1024, "tk": 512}
    # v7x: 64 MiB VMEM per TensorCore -> conservative config.
    return {"vmem": 48 << 20, "tm": 256, "tn": 512, "tk": 512}


# ---------------------------------------------------------------------------
# Tiled Linear: y = x @ W + b (optional fused GELU). bf16 MXU, f32 accumulate.
# ---------------------------------------------------------------------------
def _linear_kernel(x_ref, w_ref, b_ref, o_ref, acc_ref, *, apply_gelu):
    @pl.when(pl.program_id(2) == 0)
    def _():
        acc_ref[...] = jnp.zeros_like(acc_ref)

    acc_ref[...] += jnp.dot(x_ref[...].astype(jnp.bfloat16), w_ref[...],
                            preferred_element_type=jnp.float32)

    @pl.when(pl.program_id(2) == pl.num_programs(2) - 1)
    def _():
        y = acc_ref[...] + b_ref[...].astype(jnp.float32)
        if apply_gelu:
            # TODO(synk): nn.GELU() default is the exact erf form; the tanh
            # approximation is used in-kernel for portable Mosaic lowering.
            y = jax.nn.gelu(y, approximate=True)
        o_ref[...] = y.astype(o_ref.dtype)


def linear_pallas(x, w_t, b, *, apply_gelu=False, out_dtype=None):
    """x: (M, K); w_t: (K, N) pre-transposed (bf16); b: (N,). Returns (M, N)."""
    cfg = _hw_config()
    M, K = x.shape
    Kw, N = w_t.shape
    assert K == Kw
    out_dtype = out_dtype or x.dtype

    tm = min(_round_up(M, 8), cfg["tm"])
    tk = K if K <= cfg["tk"] else cfg["tk"]
    tn = N if N <= cfg["tn"] else cfg["tn"]
    Mp, Kp, Np = _round_up(M, tm), _round_up(K, tk), _round_up(N, tn)

    xp = _maybe_pad2d(x, Mp, Kp)
    wp = _maybe_pad2d(w_t, Kp, Np)
    bp = _maybe_pad2d(b.reshape(1, N), 1, Np)

    out = pl.pallas_call(
        functools.partial(_linear_kernel, apply_gelu=apply_gelu),
        out_shape=jax.ShapeDtypeStruct((Mp, Np), out_dtype),
        grid_spec=pltpu.PrefetchScalarGridSpec(
            num_scalar_prefetch=0,
            grid=(Mp // tm, Np // tn, Kp // tk),
            in_specs=[
                pl.BlockSpec((tm, tk), lambda i, j, k: (i, k)),
                pl.BlockSpec((tk, tn), lambda i, j, k: (k, j)),
                # bias block is resident across the i/k grid axes
                pl.BlockSpec((1, tn), lambda i, j, k: (0, j)),
            ],
            out_specs=pl.BlockSpec((tm, tn), lambda i, j, k: (i, j)),
            scratch_shapes=[pltpu.VMEM((tm, tn), jnp.float32)],
        ),
        compiler_params=pltpu.CompilerParams(
            dimension_semantics=("parallel", "parallel", "arbitrary"),
            vmem_limit_bytes=cfg["vmem"],
        ),
    )(xp, wp, bp)
    if (Mp, Np) != (M, N):
        out = out[:M, :N]
    return out


# ---------------------------------------------------------------------------
# Tiled Linear with residual-add + LayerNorm fused into the finalize branch:
#   out = LayerNorm(resid + (x @ W + b)) * gamma + beta
# ---------------------------------------------------------------------------
def _linear_add_ln_kernel(x_ref, w_ref, b_ref, r_ref, g_ref, bt_ref, o_ref,
                          acc_ref, *, eps):
    @pl.when(pl.program_id(1) == 0)
    def _():
        acc_ref[...] = jnp.zeros_like(acc_ref)

    acc_ref[...] += jnp.dot(x_ref[...].astype(jnp.bfloat16), w_ref[...],
                            preferred_element_type=jnp.float32)

    @pl.when(pl.program_id(1) == pl.num_programs(1) - 1)
    def _():
        y = (acc_ref[...] + b_ref[...].astype(jnp.float32)
             + r_ref[...].astype(jnp.float32))
        mu = jnp.mean(y, axis=-1, keepdims=True)
        yc = y - mu
        var = jnp.mean(yc * yc, axis=-1, keepdims=True)
        inv = jax.lax.rsqrt(var + eps)
        o_ref[...] = (yc * inv * g_ref[...].astype(jnp.float32)
                      + bt_ref[...].astype(jnp.float32)).astype(o_ref.dtype)


def linear_add_ln_pallas(x, w_t, b, resid, gamma, beta, *, eps=1e-5,
                         out_dtype=None):
    cfg = _hw_config()
    M, K = x.shape
    Kw, N = w_t.shape
    assert K == Kw and resid.shape == (M, N)
    out_dtype = out_dtype or resid.dtype

    tm = min(_round_up(M, 8), cfg["tm"])
    tk = K if K <= cfg["tk"] else cfg["tk"]
    Mp, Kp = _round_up(M, tm), _round_up(K, tk)

    xp = _maybe_pad2d(x, Mp, Kp)
    wp = _maybe_pad2d(w_t, Kp, N)
    rp = _maybe_pad2d(resid, Mp, N)
    b2 = b.reshape(1, N)
    g2 = gamma.reshape(1, N)
    bt2 = beta.reshape(1, N)

    out = pl.pallas_call(
        functools.partial(_linear_add_ln_kernel, eps=eps),
        out_shape=jax.ShapeDtypeStruct((Mp, N), out_dtype),
        grid_spec=pltpu.PrefetchScalarGridSpec(
            num_scalar_prefetch=0,
            grid=(Mp // tm, Kp // tk),
            in_specs=[
                pl.BlockSpec((tm, tk), lambda i, k: (i, k)),
                pl.BlockSpec((tk, N), lambda i, k: (k, 0)),
                pl.BlockSpec((1, N), lambda i, k: (0, 0)),
                # residual / gamma / beta stay resident across the k axis
                pl.BlockSpec((tm, N), lambda i, k: (i, 0)),
                pl.BlockSpec((1, N), lambda i, k: (0, 0)),
                pl.BlockSpec((1, N), lambda i, k: (0, 0)),
            ],
            out_specs=pl.BlockSpec((tm, N), lambda i, k: (i, 0)),
            scratch_shapes=[pltpu.VMEM((tm, N), jnp.float32)],
        ),
        compiler_params=pltpu.CompilerParams(
            dimension_semantics=("parallel", "arbitrary"),
            vmem_limit_bytes=cfg["vmem"],
        ),
    )(xp, wp, b2, rp, g2, bt2)
    if Mp != M:
        out = out[:M]
    return out


# ---------------------------------------------------------------------------
# Multi-head attention: one batch per grid step, all heads computed in-kernel
# from the fused QKV block; output written in the (B, S, H, Dh) layout.
# ---------------------------------------------------------------------------
def _mha_kernel(qkv_ref, o_ref, *, num_heads, head_dim, scale):
    blk = qkv_ref[...]                                # (S, H*3*Dh), bf16
    outs = []
    for h in range(num_heads):
        base = h * 3 * head_dim
        q = blk[:, base:base + head_dim]
        k = blk[:, base + head_dim:base + 2 * head_dim]
        v = blk[:, base + 2 * head_dim:base + 3 * head_dim]
        s = jax.lax.dot_general(q, k, (((1,), (1,)), ((), ())),
                                preferred_element_type=jnp.float32) * scale
        m = jnp.max(s, axis=-1, keepdims=True)
        p = jnp.exp(s - m)
        l = jnp.sum(p, axis=-1, keepdims=True)
        p = p * pl.reciprocal(l, approx=True)
        outs.append(jnp.dot(p.astype(v.dtype), v,
                            preferred_element_type=jnp.float32))
    o_ref[...] = jnp.concatenate(outs, axis=-1).astype(o_ref.dtype)


def attention_pallas(qkv, *, batch, seq, num_heads, head_dim, out_dtype):
    """qkv: (B*S, H*3*Dh) in the module's (B,S,H,3*Dh) row layout.
    Returns (B*S, H*Dh), already in the post-permute (B,S,H,Dh) layout."""
    cfg = _hw_config()
    assert seq % 8 == 0, "seq must be a multiple of 8 for (8,128) tiling"
    d_model = num_heads * head_dim
    scale = 1.0 / math.sqrt(head_dim)
    # TODO(synk): for long sequences this should become a flash-style kernel
    # (KV-tile grid axis + online softmax); one (S, 3*D) block fits VMEM here.
    return pl.pallas_call(
        functools.partial(_mha_kernel, num_heads=num_heads,
                          head_dim=head_dim, scale=scale),
        out_shape=jax.ShapeDtypeStruct((batch * seq, d_model), out_dtype),
        grid_spec=pltpu.PrefetchScalarGridSpec(
            num_scalar_prefetch=0,
            grid=(batch,),
            in_specs=[pl.BlockSpec((seq, 3 * d_model), lambda b: (b, 0))],
            out_specs=pl.BlockSpec((seq, d_model), lambda b: (b, 0)),
        ),
        compiler_params=pltpu.CompilerParams(
            dimension_semantics=("parallel",),
            vmem_limit_bytes=cfg["vmem"],
        ),
    )(qkv)


# ---------------------------------------------------------------------------
# Full Transformer block forward (PyTorch `Transformer.forward` semantics).
# ---------------------------------------------------------------------------
def transformer_forward(x, params, *, num_heads):
    B, S, D = x.shape
    Dh = D // num_heads
    x2 = x.reshape(B * S, D)

    # Fused QKV projection -> bf16 activation already in the (B,S,H,3*Dh)
    # row layout; no XLA transpose/split needed downstream.
    qkv = linear_pallas(x2, params["w_qkv_t"], params["b_qkv"],
                        out_dtype=jnp.bfloat16)                      # (B*S, 3D)

    # Per-batch attention over all heads; output already in (B,S,H,Dh) layout.
    attn = attention_pallas(qkv, batch=B, seq=S, num_heads=num_heads,
                            head_dim=Dh, out_dtype=jnp.bfloat16)     # (B*S, D)

    # out-proj + residual(x) + LayerNorm1 fused in one kernel.
    h = linear_add_ln_pallas(attn, params["w_o_t"], params["b_o"],
                             x2, params["ln1_g"], params["ln1_b"],
                             out_dtype=jnp.float32)

    # FeedForward: Linear+GELU fused, then Linear + residual(h) + LayerNorm2.
    f = linear_pallas(h, params["w_ff1_t"], params["b_ff1"],
                      apply_gelu=True, out_dtype=jnp.bfloat16)
    out = linear_add_ln_pallas(f, params["w_ff2_t"], params["b_ff2"],
                               h, params["ln2_g"], params["ln2_b"],
                               out_dtype=x.dtype)
    return out.reshape(B, S, D)


# ---------------------------------------------------------------------------
# Parameter init (nn.Linear-style) + pure-JAX reference for validation.
# ---------------------------------------------------------------------------
def init_params(key, d_model, hidden_dim):
    ks = jax.random.split(key, 8)

    def linear_init(kw, kb, fan_in, fan_out):
        bound = 1.0 / math.sqrt(fan_in)
        w = jax.random.uniform(kw, (fan_out, fan_in), jnp.float32, -bound, bound)
        b = jax.random.uniform(kb, (fan_out,), jnp.float32, -bound, bound)
        return w, b

    w_qkv, b_qkv = linear_init(ks[0], ks[1], d_model, 3 * d_model)
    w_o, b_o = linear_init(ks[2], ks[3], d_model, d_model)
    w_f1, b_f1 = linear_init(ks[4], ks[5], d_model, hidden_dim)
    w_f2, b_f2 = linear_init(ks[6], ks[7], hidden_dim, d_model)
    ones = jnp.ones((d_model,), jnp.float32)
    zeros = jnp.zeros((d_model,), jnp.float32)

    raw = dict(w_qkv=w_qkv, b_qkv=b_qkv, w_o=w_o, b_o=b_o,
               w_ff1=w_f1, b_ff1=b_f1, w_ff2=w_f2, b_ff2=b_f2,
               ln1_g=ones, ln1_b=zeros, ln2_g=ones, ln2_b=zeros)

    # Pre-transpose to (d_in, d_out) AND pre-cast to bf16 ONCE at init
    # (no per-call .T / .astype passes through HBM).
    def prep(w):
        return jnp.asarray(w.T, dtype=jnp.bfloat16)

    params = dict(w_qkv_t=prep(w_qkv), b_qkv=b_qkv,
                  w_o_t=prep(w_o), b_o=b_o,
                  w_ff1_t=prep(w_f1), b_ff1=b_f1,
                  w_ff2_t=prep(w_f2), b_ff2=b_f2,
                  ln1_g=ones, ln1_b=zeros, ln2_g=ones, ln2_b=zeros)
    return raw, params


def reference_forward(x, raw, *, num_heads, eps=1e-5):
    B, S, D = x.shape
    H, Dh = num_heads, D // num_heads

    def ln(y, g, b):
        mu = jnp.mean(y, axis=-1, keepdims=True)
        var = jnp.mean((y - mu) ** 2, axis=-1, keepdims=True)
        return (y - mu) / jnp.sqrt(var + eps) * g + b

    qkv = x @ raw["w_qkv"].T + raw["b_qkv"]
    qkv = qkv.reshape(B, S, H, 3 * Dh).transpose(0, 2, 1, 3)
    q, k, v = jnp.split(qkv, 3, axis=-1)
    s = jnp.einsum("bhqd,bhkd->bhqk", q, k) / math.sqrt(Dh)
    a = jax.nn.softmax(s, axis=-1)
    attn = jnp.einsum("bhqk,bhkd->bhqd", a, v)
    attn = attn.transpose(0, 2, 1, 3).reshape(B, S, D)
    o = attn @ raw["w_o"].T + raw["b_o"]
    h = ln(x + o, raw["ln1_g"], raw["ln1_b"])
    f = jax.nn.gelu(h @ raw["w_ff1"].T + raw["b_ff1"], approximate=True)
    f = f @ raw["w_ff2"].T + raw["b_ff2"]
    return ln(h + f, raw["ln2_g"], raw["ln2_b"])


if __name__ == "__main__":
    B, S, D, H, FF = 2, 8, 64, 4, 128   # batch, seq, d_model, heads, ff hidden
    key = jax.random.PRNGKey(0)
    kx, kp = jax.random.split(key)
    x = jax.random.normal(kx, (B, S, D), dtype=jnp.float32)
    raw, params = init_params(kp, D, FF)

    fwd = jax.jit(functools.partial(transformer_forward, num_heads=H))
    out = fwd(x, params)
    jax.block_until_ready(out)

    ref = reference_forward(x, raw, num_heads=H)
    assert out.shape == (B, S, D)
    max_err = float(jnp.max(jnp.abs(out - ref)))
    mean_err = float(jnp.mean(jnp.abs(out - ref)))
    # bf16 MXU operands vs f32 reference -> tolerance accounts for bf16 rounding.
    assert max_err < 7.5e-2, f"mismatch vs reference: max={max_err} mean={mean_err}"
    assert mean_err < 2e-2, f"mismatch vs reference: max={max_err} mean={mean_err}"
    print("KERNEL_OK")
</pallas_src>

<mosaic_0001>
module attributes {stable_mosaic.version = 11 : i64} {
  func.func @_linear_kernel(%arg0: i32, %arg1: i32, %arg2: i32, %arg3: memref<16x64xf32, #tpu.memory_space<vmem>>, %arg4: memref<64x128xbf16, #tpu.memory_space<vmem>>, %arg5: memref<1x128xf32, #tpu.memory_space<vmem>>, %arg6: memref<16x128xbf16, #tpu.memory_space<vmem>>, %arg7: memref<16x128xf32, #tpu.memory_space<vmem>>) attributes {dimension_semantics = [#tpu.dimension_semantics<parallel>, #tpu.dimension_semantics<parallel>, #tpu.dimension_semantics<arbitrary>], iteration_bounds = array<i64: 1, 1, 1>, scalar_prefetch = 0 : i64, scratch_operands = 1 : i64, tpu.core_type = #tpu.core_type<tc>, window_params = [{transform_indices = @transform_0, window_bounds = array<i64: 16, 64>}, {transform_indices = @transform_1, window_bounds = array<i64: 64, 128>}, {transform_indices = @transform_2, window_bounds = array<i64: 1, 128>}, {transform_indices = @transform_3, window_bounds = array<i64: 16, 128>}]} {
    %c0_i32 = arith.constant 0 : i32
    %0 = arith.cmpi eq, %arg2, %c0_i32 : i32
    %1 = arith.extui %0 : i1 to i32
    %c0_i32_0 = arith.constant 0 : i32
    %2 = arith.cmpi ne, %1, %c0_i32_0 : i32
    scf.if %2 {
      %cst_10 = arith.constant 0.000000e+00 : f32
      %13 = vector.broadcast %cst_10 : f32 to vector<16x128xf32>
      %c0_11 = arith.constant 0 : index
      %c0_12 = arith.constant 0 : index
      %14 = vector.load %arg7[%c0_11, %c0_12] : memref<16x128xf32, #tpu.memory_space<vmem>>, vector<16x128xf32>
      tpu.vector_store %arg7[%c0_11, %c0_12], %13 {strides = array<i32>} : memref<16x128xf32, #tpu.memory_space<vmem>>, vector<16x128xf32>,
    } else {
    }
    %c0 = arith.constant 0 : index
    %c0_1 = arith.constant 0 : index
    %3 = vector.load %arg7[%c0, %c0_1] : memref<16x128xf32, #tpu.memory_space<vmem>>, vector<16x128xf32>
    %c0_2 = arith.constant 0 : index
    %c0_3 = arith.constant 0 : index
    %4 = vector.load %arg3[%c0_2, %c0_3] : memref<16x64xf32, #tpu.memory_space<vmem>>, vector<16x64xf32>
    %5 = arith.truncf %4 : vector<16x64xf32> to vector<16x64xbf16>
    %c0_4 = arith.constant 0 : index
    %c0_5 = arith.constant 0 : index
    %6 = vector.load %arg4[%c0_4, %c0_5] : memref<64x128xbf16, #tpu.memory_space<vmem>>, vector<64x128xbf16>
    %cst = arith.constant dense<0.000000e+00> : vector<16x128xf32>
    %7 = tpu.matmul %5, %6, %cst {dimension_numbers = #tpu.dot_dimension_numbers<[1], [0], [0], [1], [0, 0, 1, 1], [], []>} : vector<16x64xbf16>, vector<64x128xbf16>, vector<16x128xf32> -> vector<16x128xf32>
    %8 = arith.addf %3, %7 : vector<16x128xf32>
    %c0_6 = arith.constant 0 : index
    %c0_7 = arith.constant 0 : index
    %9 = vector.load %arg7[%c0_6, %c0_7] : memref<16x128xf32, #tpu.memory_space<vmem>>, vector<16x128xf32>
    tpu.vector_store %arg7[%c0_6, %c0_7], %8 {strides = array<i32>} : memref<16x128xf32, #tpu.memory_space<vmem>>, vector<16x128xf32>,
    %c0_i32_8 = arith.constant 0 : i32
    %10 = arith.cmpi eq, %arg2, %c0_i32_8 : i32
    %11 = arith.extui %10 : i1 to i32
    %c0_i32_9 = arith.constant 0 : i32
    %12 = arith.cmpi ne, %11, %c0_i32_9 : i32
    scf.if %12 {
      %c0_10 = arith.constant 0 : index
      %c0_11 = arith.constant 0 : index
      %13 = vector.load %arg7[%c0_10, %c0_11] : memref<16x128xf32, #tpu.memory_space<vmem>>, vector<16x128xf32>
      %c0_12 = arith.constant 0 : index
      %c0_13 = arith.constant 0 : index
      %14 = vector.load %arg5[%c0_12, %c0_13] : memref<1x128xf32, #tpu.memory_space<vmem>>, vector<1x128xf32>
      %15 = vector.broadcast %14 : vector<1x128xf32> to vector<16x128xf32>
      %16 = arith.addf %13, %15 : vector<16x128xf32>
      %17 = arith.mulf %16, %16 : vector<16x128xf32>
      %18 = arith.mulf %16, %17 : vector<16x128xf32>
      %cst_14 = arith.constant 4.471500e-02 : f32
      %19 = vector.broadcast %cst_14 : f32 to vector<16x128xf32>
      %20 = arith.mulf %19, %18 : vector<16x128xf32>
      %21 = arith.addf %16, %20 : vector<16x128xf32>
      %cst_15 = arith.constant 0.797884583 : f32
      %22 = vector.broadcast %cst_15 : f32 to vector<16x128xf32>
      %23 = arith.mulf %22, %21 : vector<16x128xf32>
      %24 = math.tanh %23 : vector<16x128xf32>
      %cst_16 = arith.constant 1.000000e+00 : f32
      %25 = vector.broadcast %cst_16 : f32 to vector<16x128xf32>
      %26 = arith.addf %25, %24 : vector<16x128xf32>
      %cst_17 = arith.constant 5.000000e-01 : f32
      %27 = vector.broadcast %cst_17 : f32 to vector<16x128xf32>
      %28 = arith.mulf %27, %26 : vector<16x128xf32>
      %29 = arith.mulf %16, %28 : vector<16x128xf32>
      %30 = arith.truncf %29 : vector<16x128xf32> to vector<16x128xbf16>
      %c0_18 = arith.constant 0 : index
      %c0_19 = arith.constant 0 : index
      %31 = vector.load %arg6[%c0_18, %c0_19] : memref<16x128xbf16, #tpu.memory_space<vmem>>, vector<16x128xbf16>
      tpu.vector_store %arg6[%c0_18, %c0_19], %30 {strides = array<i32>} : memref<16x128xbf16, #tpu.memory_space<vmem>>, vector<16x128xbf16>,
    } else {
    }
    return
  }
  func.func @transform_0(%arg0: i32, %arg1: i32, %arg2: i32) -> (i32, i32) {
    %c0_i32 = arith.constant 0 : i32
    return %arg0, %arg2 : i32, i32
  }
  func.func @transform_1(%arg0: i32, %arg1: i32, %arg2: i32) -> (i32, i32) {
    %c0_i32 = arith.constant 0 : i32
    return %arg2, %arg1 : i32, i32
  }
  func.func @transform_2(%arg0: i32, %arg1: i32, %arg2: i32) -> (i32, i32) {
    %c0_i32 = arith.constant 0 : i32
    %c0_i32_0 = arith.constant 0 : i32
    return %c0_i32, %arg1 : i32, i32
  }
  func.func @transform_3(%arg0: i32, %arg1: i32, %arg2: i32) -> (i32, i32) {
    %c0_i32 = arith.constant 0 : i32
    return %arg0, %arg1 : i32, i32
  }
}

module attributes {stable_mosaic.version = 11 : i64} {
  func.func @_linear_kernel(%arg0: i32, %arg1: i32, %arg2: i32, %arg3: memref<16x64xf32, #tpu.memory_space<vmem>>, %arg4: memref<64x192xbf16, #tpu.memory_space<vmem>>, %arg5: memref<1x192xf32, #tpu.memory_space<vmem>>, %arg6: memref<16x192xbf16, #tpu.memory_space<vmem>>, %arg7: memref<16x192xf32, #tpu.memory_space<vmem>>) attributes {dimension_semantics = [#tpu.dimension_semantics<parallel>, #tpu.dimension_semantics<parallel>, #tpu.dimension_semantics<arbitrary>], iteration_bounds = array<i64: 1, 1, 1>, scalar_prefetch = 0 : i64, scratch_operands = 1 : i64, tpu.core_type = #tpu.core_type<tc>, window_params = [{transform_indices = @transform_0, window_bounds = array<i64: 16, 64>}, {transform_indices = @transform_1, window_bounds = array<i64: 64, 192>}, {transform_indices = @transform_2, window_bounds = array<i64: 1, 192>}, {transform_indices = @transform_3, window_bounds = array<i64: 16, 192>}]} {
    %c0_i32 = arith.constant 0 : i32
    %0 = arith.cmpi eq, %arg2, %c0_i32 : i32
    %1 = arith.extui %0 : i1 to i32
    %c0_i32_0 = arith.constant 0 : i32
    %2 = arith.cmpi ne, %1, %c0_i32_0 : i32
    scf.if %2 {
      %cst_10 = arith.constant 0.000000e+00 : f32
      %13 = vector.broadcast %cst_10 : f32 to vector<16x192xf32>
      %c0_11 = arith.constant 0 : index
      %c0_12 = arith.constant 0 : index
      %14 = vector.load %arg7[%c0_11, %c0_12] : memref<16x192xf32, #tpu.memory_space<vmem>>, vector<16x192xf32>
      tpu.vector_store %arg7[%c0_11, %c0_12], %13 {strides = array<i32>} : memref<16x192xf32, #tpu.memory_space<vmem>>, vector<16x192xf32>,
    } else {
    }
    %c0 = arith.constant 0 : index
    %c0_1 = arith.constant 0 : index
    %3 = vector.load %arg7[%c0, %c0_1] : memref<16x192xf32, #tpu.memory_space<vmem>>, vector<16x192xf32>
    %c0_2 = arith.constant 0 : index
    %c0_3 = arith.constant 0 : index
    %4 = vector.load %arg3[%c0_2, %c0_3] : memref<16x64xf32, #tpu.memory_space<vmem>>, vector<16x64xf32>
    %5 = arith.truncf %4 : vector<16x64xf32> to vector<16x64xbf16>
    %c0_4 = arith.constant 0 : index
    %c0_5 = arith.constant 0 : index
    %6 = vector.load %arg4[%c0_4, %c0_5] : memref<64x192xbf16, #tpu.memory_space<vmem>>, vector<64x192xbf16>
    %cst = arith.constant dense<0.000000e+00> : vector<16x192xf32>
    %7 = tpu.matmul %5, %6, %cst {dimension_numbers = #tpu.dot_dimension_numbers<[1], [0], [0], [1], [0, 0, 1, 1], [], []>} : vector<16x64xbf16>, vector<64x192xbf16>, vector<16x192xf32> -> vector<16x192xf32>
    %8 = arith.addf %3, %7 : vector<16x192xf32>
    %c0_6 = arith.constant 0 : index
    %c0_7 = arith.constant 0 : index
    %9 = vector.load %arg7[%c0_6, %c0_7] : memref<16x192xf32, #tpu.memory_space<vmem>>, vector<16x192xf32>
    tpu.vector_store %arg7[%c0_6, %c0_7], %8 {strides = array<i32>} : memref<16x192xf32, #tpu.memory_space<vmem>>, vector<16x192xf32>,
    %c0_i32_8 = arith.constant 0 : i32
    %10 = arith.cmpi eq, %arg2, %c0_i32_8 : i32
    %11 = arith.extui %10 : i1 to i32
    %c0_i32_9 = arith.constant 0 : i32
    %12 = arith.cmpi ne, %11, %c0_i32_9 : i32
    scf.if %12 {
      %c0_10 = arith.constant 0 : index
      %c0_11 = arith.constant 0 : index
      %13 = vector.load %arg7[%c0_10, %c0_11] : memref<16x192xf32, #tpu.memory_space<vmem>>, vector<16x192xf32>
      %c0_12 = arith.constant 0 : index
      %c0_13 = arith.constant 0 : index
      %14 = vector.load %arg5[%c0_12, %c0_13] : memref<1x192xf32, #tpu.memory_space<vmem>>, vector<1x192xf32>
      %15 = vector.broadcast %14 : vector<1x192xf32> to vector<16x192xf32>
      %16 = arith.addf %13, %15 : vector<16x192xf32>
      %17 = arith.truncf %16 : vector<16x192xf32> to vector<16x192xbf16>
      %c0_14 = arith.constant 0 : index
      %c0_15 = arith.constant 0 : index
      %18 = vector.load %arg6[%c0_14, %c0_15] : memref<16x192xbf16, #tpu.memory_space<vmem>>, vector<16x192xbf16>
      tpu.vector_store %arg6[%c0_14, %c0_15], %17 {strides = array<i32>} : memref<16x192xbf16, #tpu.memory_space<vmem>>, vector<16x192xbf16>,
    } else {
    }
    return
  }
  func.func @transform_0(%arg0: i32, %arg1: i32, %arg2: i32) -> (i32, i32) {
    %c0_i32 = arith.constant 0 : i32
    return %arg0, %arg2 : i32, i32
  }
  func.func @transform_1(%arg0: i32, %arg1: i32, %arg2: i32) -> (i32, i32) {
    %c0_i32 = arith.constant 0 : i32
    return %arg2, %arg1 : i32, i32
  }
  func.func @transform_2(%arg0: i32, %arg1: i32, %arg2: i32) -> (i32, i32) {
    %c0_i32 = arith.constant 0 : i32
    %c0_i32_0 = arith.constant 0 : i32
    return %c0_i32, %arg1 : i32, i32
  }
  func.func @transform_3(%arg0: i32, %arg1: i32, %arg2: i32) -> (i32, i32) {
    %c0_i32 = arith.constant 0 : i32
    return %arg0, %arg1 : i32, i32
  }
}

module attributes {stable_mosaic.version = 11 : i64} {
  func.func @_linear_add_ln_kernel(%arg0: i32, %arg1: i32, %arg2: memref<16x64xbf16, #tpu.memory_space<vmem>>, %arg3: memref<64x64xbf16, #tpu.memory_space<vmem>>, %arg4: memref<1x64xf32, #tpu.memory_space<vmem>>, %arg5: memref<16x64xf32, #tpu.memory_space<vmem>>, %arg6: memref<1x64xf32, #tpu.memory_space<vmem>>, %arg7: memref<1x64xf32, #tpu.memory_space<vmem>>, %arg8: memref<16x64xf32, #tpu.memory_space<vmem>>, %arg9: memref<16x64xf32, #tpu.memory_space<vmem>>) attributes {dimension_semantics = [#tpu.dimension_semantics<parallel>, #tpu.dimension_semantics<arbitrary>], iteration_bounds = array<i64: 1, 1>, scalar_prefetch = 0 : i64, scratch_operands = 1 : i64, tpu.core_type = #tpu.core_type<tc>, window_params = [{transform_indices = @transform_0, window_bounds = array<i64: 16, 64>}, {transform_indices = @transform_1, window_bounds = array<i64: 64, 64>}, {pipeline_mode = #tpu.pipeline_mode<synchronous>, transform_indices = @transform_2, window_bounds = array<i64: 1, 64>}, {transform_indices = @transform_3, window_bounds = array<i64: 16, 64>}, {pipeline_mode = #tpu.pipeline_mode<synchronous>, transform_indices = @transform_4, window_bounds = array<i64: 1, 64>}, {pipeline_mode = #tpu.pipeline_mode<synchronous>, transform_indices = @transform_5, window_bounds = array<i64: 1, 64>}, {transform_indices = @transform_6, window_bounds = array<i64: 16, 64>}]} {
    %c0_i32 = arith.constant 0 : i32
    %0 = arith.cmpi eq, %arg1, %c0_i32 : i32
    %1 = arith.extui %0 : i1 to i32
    %c0_i32_0 = arith.constant 0 : i32
    %2 = arith.cmpi ne, %1, %c0_i32_0 : i32
    scf.if %2 {
      %cst_10 = arith.constant 0.000000e+00 : f32
      %12 = vector.broadcast %cst_10 : f32 to vector<16x64xf32>
      %c0_11 = arith.constant 0 : index
      %c0_12 = arith.constant 0 : index
      %13 = vector.load %arg9[%c0_11, %c0_12] : memref<16x64xf32, #tpu.memory_space<vmem>>, vector<16x64xf32>
      tpu.vector_store %arg9[%c0_11, %c0_12], %12 {strides = array<i32>} : memref<16x64xf32, #tpu.memory_space<vmem>>, vector<16x64xf32>,
    } else {
    }
    %c0 = arith.constant 0 : index
    %c0_1 = arith.constant 0 : index
    %3 = vector.load %arg9[%c0, %c0_1] : memref<16x64xf32, #tpu.memory_space<vmem>>, vector<16x64xf32>
    %c0_2 = arith.constant 0 : index
    %c0_3 = arith.constant 0 : index
    %4 = vector.load %arg2[%c0_2, %c0_3] : memref<16x64xbf16, #tpu.memory_space<vmem>>, vector<16x64xbf16>
    %c0_4 = arith.constant 0 : index
    %c0_5 = arith.constant 0 : index
    %5 = vector.load %arg3[%c0_4, %c0_5] : memref<64x64xbf16, #tpu.memory_space<vmem>>, vector<64x64xbf16>
    %cst = arith.constant dense<0.000000e+00> : vector<16x64xf32>
    %6 = tpu.matmul %4, %5, %cst {dimension_numbers = #tpu.dot_dimension_numbers<[1], [0], [0], [1], [0, 0, 1, 1], [], []>} : vector<16x64xbf16>, vector<64x64xbf16>, vector<16x64xf32> -> vector<16x64xf32>
    %7 = arith.addf %3, %6 : vector<16x64xf32>
    %c0_6 = arith.constant 0 : index
    %c0_7 = arith.constant 0 : index
    %8 = vector.load %arg9[%c0_6, %c0_7] : memref<16x64xf32, #tpu.memory_space<vmem>>, vector<16x64xf32>
    tpu.vector_store %arg9[%c0_6, %c0_7], %7 {strides = array<i32>} : memref<16x64xf32, #tpu.memory_space<vmem>>, vector<16x64xf32>,
    %c0_i32_8 = arith.constant 0 : i32
    %9 = arith.cmpi eq, %arg1, %c0_i32_8 : i32
    %10 = arith.extui %9 : i1 to i32
    %c0_i32_9 = arith.constant 0 : i32
    %11 = arith.cmpi ne, %10, %c0_i32_9 : i32
    scf.if %11 {
      %c0_10 = arith.constant 0 : index
      %c0_11 = arith.constant 0 : index
      %12 = vector.load %arg9[%c0_10, %c0_11] : memref<16x64xf32, #tpu.memory_space<vmem>>, vector<16x64xf32>
      %c0_12 = arith.constant 0 : index
      %c0_13 = arith.constant 0 : index
      %13 = vector.load %arg4[%c0_12, %c0_13] : memref<1x64xf32, #tpu.memory_space<vmem>>, vector<1x64xf32>
      %14 = vector.broadcast %13 : vector<1x64xf32> to vector<16x64xf32>
      %15 = arith.addf %12, %14 : vector<16x64xf32>
      %c0_14 = arith.constant 0 : index
      %c0_15 = arith.constant 0 : index
      %16 = vector.load %arg5[%c0_14, %c0_15] : memref<16x64xf32, #tpu.memory_space<vmem>>, vector<16x64xf32>
      %17 = arith.addf %15, %16 : vector<16x64xf32>
      %cst_16 = arith.constant dense<0.000000e+00> : vector<16xf32>
      %18 = vector.multi_reduction <add>, %17, %cst_16 [1] : vector<16x64xf32> to vector<16xf32>
      %19 = vector.shape_cast %18 : vector<16xf32> to vector<16x1xf32>
      %cst_17 = arith.constant 6.400000e+01 : f32
      %20 = vector.broadcast %cst_17 : f32 to vector<16x1xf32>
      %21 = arith.divf %19, %20 : vector<16x1xf32>
      %22 = vector.broadcast %21 : vector<16x1xf32> to vector<16x64xf32>
      %23 = arith.subf %17, %22 : vector<16x64xf32>
      %24 = arith.mulf %23, %23 : vector<16x64xf32>
      %cst_18 = arith.constant dense<0.000000e+00> : vector<16xf32>
      %25 = vector.multi_reduction <add>, %24, %cst_18 [1] : vector<16x64xf32> to vector<16xf32>
      %26 = vector.shape_cast %25 : vector<16xf32> to vector<16x1xf32>
      %cst_19 = arith.constant 6.400000e+01 : f32
      %27 = vector.broadcast %cst_19 : f32 to vector<16x1xf32>
      %28 = arith.divf %26, %27 : vector<16x1xf32>
      %cst_20 = arith.constant 9.99999974E-6 : f32
      %29 = vector.broadcast %cst_20 : f32 to vector<16x1xf32>
      %30 = arith.addf %28, %29 : vector<16x1xf32>
      %31 = math.rsqrt %30 : vector<16x1xf32>
      %32 = vector.broadcast %31 : vector<16x1xf32> to vector<16x64xf32>
      %33 = arith.mulf %23, %32 : vector<16x64xf32>
      %c0_21 = arith.constant 0 : index
      %c0_22 = arith.constant 0 : index
      %34 = vector.load %arg6[%c0_21, %c0_22] : memref<1x64xf32, #tpu.memory_space<vmem>>, vector<1x64xf32>
      %35 = vector.broadcast %34 : vector<1x64xf32> to vector<16x64xf32>
      %36 = arith.mulf %33, %35 : vector<16x64xf32>
      %c0_23 = arith.constant 0 : index
      %c0_24 = arith.constant 0 : index
      %37 = vector.load %arg7[%c0_23, %c0_24] : memref<1x64xf32, #tpu.memory_space<vmem>>, vector<1x64xf32>
      %38 = vector.broadcast %37 : vector<1x64xf32> to vector<16x64xf32>
      %39 = arith.addf %36, %38 : vector<16x64xf32>
      %c0_25 = arith.constant 0 : index
      %c0_26 = arith.constant 0 : index
      %40 = vector.load %arg8[%c0_25, %c0_26] : memref<16x64xf32, #tpu.memory_space<vmem>>, vector<16x64xf32>
      tpu.vector_store %arg8[%c0_25, %c0_26], %39 {strides = array<i32>} : memref<16x64xf32, #tpu.memory_space<vmem>>, vector<16x64xf32>,
    } else {
    }
    return
  }
  func.func @transform_0(%arg0: i32, %arg1: i32) -> (i32, i32) {
    %c0_i32 = arith.constant 0 : i32
    return %arg0, %arg1 : i32, i32
  }
  func.func @transform_1(%arg0: i32, %arg1: i32) -> (i32, i32) {
    %c0_i32 = arith.constant 0 : i32
    %c0_i32_0 = arith.constant 0 : i32
    return %arg1, %c0_i32 : i32, i32
  }
  func.func @transform_2(%arg0: i32, %arg1: i32) -> (i32, i32) {
    %c0_i32 = arith.constant 0 : i32
    %c0_i32_0 = arith.constant 0 : i32
    %c0_i32_1 = arith.constant 0 : i32
    return %c0_i32, %c0_i32_0 : i32, i32
  }
  func.func @transform_3(%arg0: i32, %arg1: i32) -> (i32, i32) {
    %c0_i32 = arith.constant 0 : i32
    %c0_i32_0 = arith.constant 0 : i32
    return %arg0, %c0_i32 : i32, i32
  }
  func.func @transform_4(%arg0: i32, %arg1: i32) -> (i32, i32) {
    %c0_i32 = arith.constant 0 : i32
    %c0_i32_0 = arith.constant 0 : i32
    %c0_i32_1 = arith.constant 0 : i32
    return %c0_i32, %c0_i32_0 : i32, i32
  }
  func.func @transform_5(%arg0: i32, %arg1: i32) -> (i32, i32) {
    %c0_i32 = arith.constant 0 : i32
    %c0_i32_0 = arith.constant 0 : i32
    %c0_i32_1 = arith.constant 0 : i32
    return %c0_i32, %c0_i32_0 : i32, i32
  }
  func.func @transform_6(%arg0: i32, %arg1: i32) -> (i32, i32) {
    %c0_i32 = arith.constant 0 : i32
    %c0_i32_0 = arith.constant 0 : i32
    return %arg0, %c0_i32 : i32, i32
  }
}

module attributes {stable_mosaic.version = 11 : i64} {
  func.func @_mha_kernel(%arg0: i32, %arg1: memref<8x192xbf16, #tpu.memory_space<vmem>>, %arg2: memref<8x64xbf16, #tpu.memory_space<vmem>>) attributes {dimension_semantics = [#tpu.dimension_semantics<parallel>], iteration_bounds = array<i64: 2>, scalar_prefetch = 0 : i64, scratch_operands = 0 : i64, tpu.core_type = #tpu.core_type<tc>, window_params = [{transform_indices = @transform_0, window_bounds = array<i64: 8, 192>}, {transform_indices = @transform_1, window_bounds = array<i64: 8, 64>}]} {
    %c0 = arith.constant 0 : index
    %c0_0 = arith.constant 0 : index
    %0 = vector.load %arg1[%c0, %c0_0] : memref<8x192xbf16, #tpu.memory_space<vmem>>, vector<8x192xbf16>
    %1 = vector.extract_strided_slice %0 {offsets = [0, 0], sizes = [8, 16], strides = [1, 1]} : vector<8x192xbf16> to vector<8x16xbf16>
    %2 = vector.extract_strided_slice %0 {offsets = [0, 16], sizes = [8, 16], strides = [1, 1]} : vector<8x192xbf16> to vector<8x16xbf16>
    %3 = vector.extract_strided_slice %0 {offsets = [0, 32], sizes = [8, 16], strides = [1, 1]} : vector<8x192xbf16> to vector<8x16xbf16>
    %cst = arith.constant dense<0.000000e+00> : vector<8x8xf32>
    %4 = tpu.matmul %1, %2, %cst {dimension_numbers = #tpu.dot_dimension_numbers<[1], [1], [0], [0], [0, 0, 1, 0], [], []>} : vector<8x16xbf16>, vector<8x16xbf16>, vector<8x8xf32> -> vector<8x8xf32>
    %cst_1 = arith.constant 2.500000e-01 : f32
    %5 = vector.broadcast %cst_1 : f32 to vector<8x8xf32>
    %6 = arith.mulf %4, %5 : vector<8x8xf32>
    %cst_2 = arith.constant dense<0xFF800000> : vector<8xf32>
    %7 = vector.multi_reduction <maximumf>, %6, %cst_2 [1] : vector<8x8xf32> to vector<8xf32>
    %8 = vector.shape_cast %7 : vector<8xf32> to vector<8x1xf32>
    %9 = vector.broadcast %8 : vector<8x1xf32> to vector<8x8xf32>
    %10 = arith.subf %6, %9 : vector<8x8xf32>
    %11 = math.exp %10 : vector<8x8xf32>
    %cst_3 = arith.constant dense<0.000000e+00> : vector<8xf32>
    %12 = vector.multi_reduction <add>, %11, %cst_3 [1] : vector<8x8xf32> to vector<8xf32>
    %13 = vector.shape_cast %12 : vector<8xf32> to vector<8x1xf32>
    %14 = tpu.reciprocal %13 {approx = true} : vector<8x1xf32> -> vector<8x1xf32>
    %15 = vector.broadcast %14 : vector<8x1xf32> to vector<8x8xf32>
    %16 = arith.mulf %11, %15 : vector<8x8xf32>
    %17 = arith.truncf %16 : vector<8x8xf32> to vector<8x8xbf16>
    %cst_4 = arith.constant dense<0.000000e+00> : vector<8x16xf32>
    %18 = tpu.matmul %17, %3, %cst_4 {dimension_numbers = #tpu.dot_dimension_numbers<[1], [0], [0], [1], [0, 0, 1, 1], [], []>} : vector<8x8xbf16>, vector<8x16xbf16>, vector<8x16xf32> -> vector<8x16xf32>
    %19 = vector.extract_strided_slice %0 {offsets = [0, 48], sizes = [8, 16], strides = [1, 1]} : vector<8x192xbf16> to vector<8x16xbf16>
    %20 = vector.extract_strided_slice %0 {offsets = [0, 64], sizes = [8, 16], strides = [1, 1]} : vector<8x192xbf16> to vector<8x16xbf16>
    %21 = vector.extract_strided_slice %0 {offsets = [0, 80], sizes = [8, 16], strides = [1, 1]} : vector<8x192xbf16> to vector<8x16xbf16>
    %cst_5 = arith.constant dense<0.000000e+00> : vector<8x8xf32>
    %22 = tpu.matmul %19, %20, %cst_5 {dimension_numbers = #tpu.dot_dimension_numbers<[1], [1], [0], [0], [0, 0, 1, 0], [], []>} : vector<8x16xbf16>, vector<8x16xbf16>, vector<8x8xf32> -> vector<8x8xf32>
    %cst_6 = arith.constant 2.500000e-01 : f32
    %23 = vector.broadcast %cst_6 : f32 to vector<8x8xf32>
    %24 = arith.mulf %22, %23 : vector<8x8xf32>
    %cst_7 = arith.constant dense<0xFF800000> : vector<8xf32>
    %25 = vector.multi_reduction <maximumf>, %24, %cst_7 [1] : vector<8x8xf32> to vector<8xf32>
    %26 = vector.shape_cast %25 : vector<8xf32> to vector<8x1xf32>
    %27 = vector.broadcast %26 : vector<8x1xf32> to vector<8x8xf32>
    %28 = arith.subf %24, %27 : vector<8x8xf32>
    %29 = math.exp %28 : vector<8x8xf32>
    %cst_8 = arith.constant dense<0.000000e+00> : vector<8xf32>
    %30 = vector.multi_reduction <add>, %29, %cst_8 [1] : vector<8x8xf32> to vector<8xf32>
    %31 = vector.shape_cast %30 : vector<8xf32> to vector<8x1xf32>
    %32 = tpu.reciprocal %31 {approx = true} : vector<8x1xf32> -> vector<8x1xf32>
    %33 = vector.broadcast %32 : vector<8x1xf32> to vector<8x8xf32>
    %34 = arith.mulf %29, %33 : vector<8x8xf32>
    %35 = arith.truncf %34 : vector<8x8xf32> to vector<8x8xbf16>
    %cst_9 = arith.constant dense<0.000000e+00> : vector<8x16xf32>
    %36 = tpu.matmul %35, %21, %cst_9 {dimension_numbers = #tpu.dot_dimension_numbers<[1], [0], [0], [1], [0, 0, 1, 1], [], []>} : vector<8x8xbf16>, vector<8x16xbf16>, vector<8x16xf32> -> vector<8x16xf32>
    %37 = vector.extract_strided_slice %0 {offsets = [0, 96], sizes = [8, 16], strides = [1, 1]} : vector<8x192xbf16> to vector<8x16xbf16>
    %38 = vector.extract_strided_slice %0 {offsets = [0, 112], sizes = [8, 16], strides = [1, 1]} : vector<8x192xbf16> to vector<8x16xbf16>
    %39 = vector.extract_strided_slice %0 {offsets = [0, 128], sizes = [8, 16], strides = [1, 1]} : vector<8x192xbf16> to vector<8x16xbf16>
    %cst_10 = arith.constant dense<0.000000e+00> : vector<8x8xf32>
    %40 = tpu.matmul %37, %38, %cst_10 {dimension_numbers = #tpu.dot_dimension_numbers<[1], [1], [0], [0], [0, 0, 1, 0], [], []>} : vector<8x16xbf16>, vector<8x16xbf16>, vector<8x8xf32> -> vector<8x8xf32>
    %cst_11 = arith.constant 2.500000e-01 : f32
    %41 = vector.broadcast %cst_11 : f32 to vector<8x8xf32>
    %42 = arith.mulf %40, %41 : vector<8x8xf32>
    %cst_12 = arith.constant dense<0xFF800000> : vector<8xf32>
    %43 = vector.multi_reduction <maximumf>, %42, %cst_12 [1] : vector<8x8xf32> to vector<8xf32>
    %44 = vector.shape_cast %43 : vector<8xf32> to vector<8x1xf32>
    %45 = vector.broadcast %44 : vector<8x1xf32> to vector<8x8xf32>
    %46 = arith.subf %42, %45 : vector<8x8xf32>
    %47 = math.exp %46 : vector<8x8xf32>
    %cst_13 = arith.constant dense<0.000000e+00> : vector<8xf32>
    %48 = vector.multi_reduction <add>, %47, %cst_13 [1] : vector<8x8xf32> to vector<8xf32>
    %49 = vector.shape_cast %48 : vector<8xf32> to vector<8x1xf32>
    %50 = tpu.reciprocal %49 {approx = true} : vector<8x1xf32> -> vector<8x1xf32>
    %51 = vector.broadcast %50 : vector<8x1xf32> to vector<8x8xf32>
    %52 = arith.mulf %47, %51 : vector<8x8xf32>
    %53 = arith.truncf %52 : vector<8x8xf32> to vector<8x8xbf16>
    %cst_14 = arith.constant dense<0.000000e+00> : vector<8x16xf32>
    %54 = tpu.matmul %53, %39, %cst_14 {dimension_numbers = #tpu.dot_dimension_numbers<[1], [0], [0], [1], [0, 0, 1, 1], [], []>} : vector<8x8xbf16>, vector<8x16xbf16>, vector<8x16xf32> -> vector<8x16xf32>
    %55 = vector.extract_strided_slice %0 {offsets = [0, 144], sizes = [8, 16], strides = [1, 1]} : vector<8x192xbf16> to vector<8x16xbf16>
    %56 = vector.extract_strided_slice %0 {offsets = [0, 160], sizes = [8, 16], strides = [1, 1]} : vector<8x192xbf16> to vector<8x16xbf16>
    %57 = vector.extract_strided_slice %0 {offsets = [0, 176], sizes = [8, 16], strides = [1, 1]} : vector<8x192xbf16> to vector<8x16xbf16>
    %cst_15 = arith.constant dense<0.000000e+00> : vector<8x8xf32>
    %58 = tpu.matmul %55, %56, %cst_15 {dimension_numbers = #tpu.dot_dimension_numbers<[1], [1], [0], [0], [0, 0, 1, 0], [], []>} : vector<8x16xbf16>, vector<8x16xbf16>, vector<8x8xf32> -> vector<8x8xf32>
    %cst_16 = arith.constant 2.500000e-01 : f32
    %59 = vector.broadcast %cst_16 : f32 to vector<8x8xf32>
    %60 = arith.mulf %58, %59 : vector<8x8xf32>
    %cst_17 = arith.constant dense<0xFF800000> : vector<8xf32>
    %61 = vector.multi_reduction <maximumf>, %60, %cst_17 [1] : vector<8x8xf32> to vector<8xf32>
    %62 = vector.shape_cast %61 : vector<8xf32> to vector<8x1xf32>
    %63 = vector.broadcast %62 : vector<8x1xf32> to vector<8x8xf32>
    %64 = arith.subf %60, %63 : vector<8x8xf32>
    %65 = math.exp %64 : vector<8x8xf32>
    %cst_18 = arith.constant dense<0.000000e+00> : vector<8xf32>
    %66 = vector.multi_reduction <add>, %65, %cst_18 [1] : vector<8x8xf32> to vector<8xf32>
    %67 = vector.shape_cast %66 : vector<8xf32> to vector<8x1xf32>
    %68 = tpu.reciprocal %67 {approx = true} : vector<8x1xf32> -> vector<8x1xf32>
    %69 = vector.broadcast %68 : vector<8x1xf32> to vector<8x8xf32>
    %70 = arith.mulf %65, %69 : vector<8x8xf32>
    %71 = arith.truncf %70 : vector<8x8xf32> to vector<8x8xbf16>
    %cst_19 = arith.constant dense<0.000000e+00> : vector<8x16xf32>
    %72 = tpu.matmul %71, %57, %cst_19 {dimension_numbers = #tpu.dot_dimension_numbers<[1], [0], [0], [1], [0, 0, 1, 1], [], []>} : vector<8x8xbf16>, vector<8x16xbf16>, vector<8x16xf32> -> vector<8x16xf32>
    %73 = tpu.concatenate %18, %36, %54, %72 in 1 : vector<8x16xf32>, vector<8x16xf32>, vector<8x16xf32>, vector<8x16xf32> -> vector<8x64xf32>
    %74 = arith.truncf %73 : vector<8x64xf32> to vector<8x64xbf16>
    %c0_20 = arith.constant 0 : index
    %c0_21 = arith.constant 0 : index
    %75 = vector.load %arg2[%c0_20, %c0_21] : memref<8x64xbf16, #tpu.memory_space<vmem>>, vector<8x64xbf16>
    tpu.vector_store %arg2[%c0_20, %c0_21], %74 {strides = array<i32>} : memref<8x64xbf16, #tpu.memory_space<vmem>>, vector<8x64xbf16>,
    return
  }
  func.func @transform_0(%arg0: i32) -> (i32, i32) {
    %c0_i32 = arith.constant 0 : i32
    %c0_i32_0 = arith.constant 0 : i32
    return %arg0, %c0_i32 : i32, i32
  }
  func.func @transform_1(%arg0: i32) -> (i32, i32) {
    %c0_i32 = arith.constant 0 : i32
    %c0_i32_0 = arith.constant 0 : i32
    return %arg0, %c0_i32 : i32, i32
  }
}

module attributes {stable_mosaic.version = 11 : i64} {
  func.func @_linear_add_ln_kernel(%arg0: i32, %arg1: i32, %arg2: memref<16x128xbf16, #tpu.memory_space<vmem>>, %arg3: memref<128x64xbf16, #tpu.memory_space<vmem>>, %arg4: memref<1x64xf32, #tpu.memory_space<vmem>>, %arg5: memref<16x64xf32, #tpu.memory_space<vmem>>, %arg6: memref<1x64xf32, #tpu.memory_space<vmem>>, %arg7: memref<1x64xf32, #tpu.memory_space<vmem>>, %arg8: memref<16x64xf32, #tpu.memory_space<vmem>>, %arg9: memref<16x64xf32, #tpu.memory_space<vmem>>) attributes {dimension_semantics = [#tpu.dimension_semantics<parallel>, #tpu.dimension_semantics<arbitrary>], iteration_bounds = array<i64: 1, 1>, scalar_prefetch = 0 : i64, scratch_operands = 1 : i64, tpu.core_type = #tpu.core_type<tc>, window_params = [{transform_indices = @transform_0, window_bounds = array<i64: 16, 128>}, {transform_indices = @transform_1, window_bounds = array<i64: 128, 64>}, {pipeline_mode = #tpu.pipeline_mode<synchronous>, transform_indices = @transform_2, window_bounds = array<i64: 1, 64>}, {transform_indices = @transform_3, window_bounds = array<i64: 16, 64>}, {pipeline_mode = #tpu.pipeline_mode<synchronous>, transform_indices = @transform_4, window_bounds = array<i64: 1, 64>}, {pipeline_mode = #tpu.pipeline_mode<synchronous>, transform_indices = @transform_5, window_bounds = array<i64: 1, 64>}, {transform_indices = @transform_6, window_bounds = array<i64: 16, 64>}]} {
    %c0_i32 = arith.constant 0 : i32
    %0 = arith.cmpi eq, %arg1, %c0_i32 : i32
    %1 = arith.extui %0 : i1 to i32
    %c0_i32_0 = arith.constant 0 : i32
    %2 = arith.cmpi ne, %1, %c0_i32_0 : i32
    scf.if %2 {
      %cst_10 = arith.constant 0.000000e+00 : f32
      %12 = vector.broadcast %cst_10 : f32 to vector<16x64xf32>
      %c0_11 = arith.constant 0 : index
      %c0_12 = arith.constant 0 : index
      %13 = vector.load %arg9[%c0_11, %c0_12] : memref<16x64xf32, #tpu.memory_space<vmem>>, vector<16x64xf32>
      tpu.vector_store %arg9[%c0_11, %c0_12], %12 {strides = array<i32>} : memref<16x64xf32, #tpu.memory_space<vmem>>, vector<16x64xf32>,
    } else {
    }
    %c0 = arith.constant 0 : index
    %c0_1 = arith.constant 0 : index
    %3 = vector.load %arg9[%c0, %c0_1] : memref<16x64xf32, #tpu.memory_space<vmem>>, vector<16x64xf32>
    %c0_2 = arith.constant 0 : index
    %c0_3 = arith.constant 0 : index
    %4 = vector.load %arg2[%c0_2, %c0_3] : memref<16x128xbf16, #tpu.memory_space<vmem>>, vector<16x128xbf16>
    %c0_4 = arith.constant 0 : index
    %c0_5 = arith.constant 0 : index
    %5 = vector.load %arg3[%c0_4, %c0_5] : memref<128x64xbf16, #tpu.memory_space<vmem>>, vector<128x64xbf16>
    %cst = arith.constant dense<0.000000e+00> : vector<16x64xf32>
    %6 = tpu.matmul %4, %5, %cst {dimension_numbers = #tpu.dot_dimension_numbers<[1], [0], [0], [1], [0, 0, 1, 1], [], []>} : vector<16x128xbf16>, vector<128x64xbf16>, vector<16x64xf32> -> vector<16x64xf32>
    %7 = arith.addf %3, %6 : vector<16x64xf32>
    %c0_6 = arith.constant 0 : index
    %c0_7 = arith.constant 0 : index
    %8 = vector.load %arg9[%c0_6, %c0_7] : memref<16x64xf32, #tpu.memory_space<vmem>>, vector<16x64xf32>
    tpu.vector_store %arg9[%c0_6, %c0_7], %7 {strides = array<i32>} : memref<16x64xf32, #tpu.memory_space<vmem>>, vector<16x64xf32>,
    %c0_i32_8 = arith.constant 0 : i32
    %9 = arith.cmpi eq, %arg1, %c0_i32_8 : i32
    %10 = arith.extui %9 : i1 to i32
    %c0_i32_9 = arith.constant 0 : i32
    %11 = arith.cmpi ne, %10, %c0_i32_9 : i32
    scf.if %11 {
      %c0_10 = arith.constant 0 : index
      %c0_11 = arith.constant 0 : index
      %12 = vector.load %arg9[%c0_10, %c0_11] : memref<16x64xf32, #tpu.memory_space<vmem>>, vector<16x64xf32>
      %c0_12 = arith.constant 0 : index
      %c0_13 = arith.constant 0 : index
      %13 = vector.load %arg4[%c0_12, %c0_13] : memref<1x64xf32, #tpu.memory_space<vmem>>, vector<1x64xf32>
      %14 = vector.broadcast %13 : vector<1x64xf32> to vector<16x64xf32>
      %15 = arith.addf %12, %14 : vector<16x64xf32>
      %c0_14 = arith.constant 0 : index
      %c0_15 = arith.constant 0 : index
      %16 = vector.load %arg5[%c0_14, %c0_15] : memref<16x64xf32, #tpu.memory_space<vmem>>, vector<16x64xf32>
      %17 = arith.addf %15, %16 : vector<16x64xf32>
      %cst_16 = arith.constant dense<0.000000e+00> : vector<16xf32>
      %18 = vector.multi_reduction <add>, %17, %cst_16 [1] : vector<16x64xf32> to vector<16xf32>
      %19 = vector.shape_cast %18 : vector<16xf32> to vector<16x1xf32>
      %cst_17 = arith.constant 6.400000e+01 : f32
      %20 = vector.broadcast %cst_17 : f32 to vector<16x1xf32>
      %21 = arith.divf %19, %20 : vector<16x1xf32>
      %22 = vector.broadcast %21 : vector<16x1xf32> to vector<16x64xf32>
      %23 = arith.subf %17, %22 : vector<16x64xf32>
      %24 = arith.mulf %23, %23 : vector<16x64xf32>
      %cst_18 = arith.constant dense<0.000000e+00> : vector<16xf32>
      %25 = vector.multi_reduction <add>, %24, %cst_18 [1] : vector<16x64xf32> to vector<16xf32>
      %26 = vector.shape_cast %25 : vector<16xf32> to vector<16x1xf32>
      %cst_19 = arith.constant 6.400000e+01 : f32
      %27 = vector.broadcast %cst_19 : f32 to vector<16x1xf32>
      %28 = arith.divf %26, %27 : vector<16x1xf32>
      %cst_20 = arith.constant 9.99999974E-6 : f32
      %29 = vector.broadcast %cst_20 : f32 to vector<16x1xf32>
      %30 = arith.addf %28, %29 : vector<16x1xf32>
      %31 = math.rsqrt %30 : vector<16x1xf32>
      %32 = vector.broadcast %31 : vector<16x1xf32> to vector<16x64xf32>
      %33 = arith.mulf %23, %32 : vector<16x64xf32>
      %c0_21 = arith.constant 0 : index
      %c0_22 = arith.constant 0 : index
      %34 = vector.load %arg6[%c0_21, %c0_22] : memref<1x64xf32, #tpu.memory_space<vmem>>, vector<1x64xf32>
      %35 = vector.broadcast %34 : vector<1x64xf32> to vector<16x64xf32>
      %36 = arith.mulf %33, %35 : vector<16x64xf32>
      %c0_23 = arith.constant 0 : index
      %c0_24 = arith.constant 0 : index
      %37 = vector.load %arg7[%c0_23, %c0_24] : memref<1x64xf32, #tpu.memory_space<vmem>>, vector<1x64xf32>
      %38 = vector.broadcast %37 : vector<1x64xf32> to vector<16x64xf32>
      %39 = arith.addf %36, %38 : vector<16x64xf32>
      %c0_25 = arith.constant 0 : index
      %c0_26 = arith.constant 0 : index
      %40 = vector.load %arg8[%c0_25, %c0_26] : memref<16x64xf32, #tpu.memory_space<vmem>>, vector<16x64xf32>
      tpu.vector_store %arg8[%c0_25, %c0_26], %39 {strides = array<i32>} : memref<16x64xf32, #tpu.memory_space<vmem>>, vector<16x64xf32>,
    } else {
    }
    return
  }
  func.func @transform_0(%arg0: i32, %arg1: i32) -> (i32, i32) {
    %c0_i32 = arith.constant 0 : i32
    return %arg0, %arg1 : i32, i32
  }
  func.func @transform_1(%arg0: i32, %arg1: i32) -> (i32, i32) {
    %c0_i32 = arith.constant 0 : i32
    %c0_i32_0 = arith.constant 0 : i32
    return %arg1, %c0_i32 : i32, i32
  }
  func.func @transform_2(%arg0: i32, %arg1: i32) -> (i32, i32) {
    %c0_i32 = arith.constant 0 : i32
    %c0_i32_0 = arith.constant 0 : i32
    %c0_i32_1 = arith.constant 0 : i32
    return %c0_i32, %c0_i32_0 : i32, i32
  }
  func.func @transform_3(%arg0: i32, %arg1: i32) -> (i32, i32) {
    %c0_i32 = arith.constant 0 : i32
    %c0_i32_0 = arith.constant 0 : i32
    return %arg0, %c0_i32 : i32, i32
  }
  func.func @transform_4(%arg0: i32, %arg1: i32) -> (i32, i32) {
    %c0_i32 = arith.constant 0 : i32
    %c0_i32_0 = arith.constant 0 : i32
    %c0_i32_1 = arith.constant 0 : i32
    return %c0_i32, %c0_i32_0 : i32, i32
  }
  func.func @transform_5(%arg0: i32, %arg1: i32) -> (i32, i32) {
    %c0_i32 = arith.constant 0 : i32
    %c0_i32_0 = arith.constant 0 : i32
    %c0_i32_1 = arith.constant 0 : i32
    return %c0_i32, %c0_i32_0 : i32, i32
  }
  func.func @transform_6(%arg0: i32, %arg1: i32) -> (i32, i32) {
    %c0_i32 = arith.constant 0 : i32
    %c0_i32_0 = arith.constant 0 : i32
    return %arg0, %c0_i32 : i32, i32
  }
}

</mosaic_0001>

<bundles_post_ra>
// kernel: transformer_forward.5
= control target key start
LH: loop header
LB: loop body
LE: loop exit
PB: predicated region body
PF: predicated region fallthrough
CT: control target
= control target key end

     0   :  { %8 = vsyncpa [#allocation4], 0  ;;  %s247_s12 = smov [#allocation3]   ;;  %s304_s0 = inlined_call_operand.vmem [shape: f32[16,64], index: 0, kind: input, shape index: {}]   ;;  %s305_s1 = inlined_call_operand.hbm [shape: bf16[64,192], index: 1, kind: input, shape index: {}]   ;;  %s306_s2 = inlined_call_operand.vmem [shape: f32[1,192], index: 2, kind: input, shape index: {}]   ;;  %s307_s3 = inlined_call_operand.vmem [shape: bf16[16,192], index: 3, kind: output, shape index: {}]  }
   0x1   :  { %s16_s13 = sshll.u32 %s247_s12, 4  ;;  %s223_s16 = scalar_lea.hbm %s305_s1, 1024  ;;  %s17_s13 = int_to_ptr.vmem [resolvable:$true] %s16_s13 }
   0x2   :  { %p224_p0 = scmp.ne.s32.totalorder %s305_s1, %s223_s16  ;;  %p227_p1 = scmp.lt.u32.totalorder %s223_s16, %s305_s1 }
   0x4   :  { %p229_p2 = pnand %p227_p1, %p224_p0 }
   0x6   :  { %232 = shalt.err (!%p229_p2)
}
   0x7   :  { %s233_s21 = scalar_lea.vmem %s17_s13, 1024  ;;  %p238_p4 = scmp.lt.s32.totalorder %s17_s13, %s17_s13 }
   0x8   :  { %p234_p3 = scmp.ne.s32.totalorder %s17_s13, %s233_s21  ;;  %p239_p5 = scmp.lt.s32.totalorder %s233_s21, %s233_s21 }
   0xa   :  { %p240_p6 = por %p239_p5, %p238_p4 }
   0xc   :  { %p241_p7 = pnand %p240_p6, %p234_p3 }
   0xe   :  { %244 = shalt.err (!%p241_p7)
}
   0xf   :  { %s248_s22 = smov 128   ;;  %s249_s23 = smov 8  }
  0x10   :  { %22 = dma.hbm_to_vmem [thread:$0]  %s305_s1, 1024, %s17_s13, [#allocation4], %s248_s22, %s248_s22, %s249_s23  }
  0x11   :  { %245 = dma.done.wait [#allocation4], 1024  }
  0x12   :  { %246 = vsyncadd [#allocation4], 4294966272  ;;  %vm34_vm0 = vcmask 523264   ;;  %v250_v0 = vmov 0   ;;  %v251_v1 = vmov 0.0   ;;  %v42_v10 = vld [vmem:[%s304_s0] sm:$0xff]  ;;  %v157_v13 = vlaneseq }
  0x13   :  { %129 = vmatprep.mubr.bf16.mxu0 %v250_v0  ;;  %35 = vst.msk [vmem:[#allocation2 + $0x8] sm:$0xff] %vm34_vm0, %v251_v1  ;;  %37 = vst.msk [vmem:[#allocation2 + $0x18] sm:$0xff] %vm34_vm0, %v251_v1  ;;  %v211_v2 = vld [vmem:[#allocation3 + $0x4] ss:$8 sps:$4 sm:$0xff]   ;;  %v213_v3 = vld [vmem:[#allocation3] ss:$8 sps:$4 sm:$0xff]  }
  0x14   :  { %97 = vmatprep.subr.bf16.mxu0 %v211_v2  ;;  %v214_v4 = vld [vmem:[#allocation3 + $0x14] ss:$8 sps:$4 sm:$0xff]   ;;  %v216_v5 = vld [vmem:[#allocation3 + $0x10] ss:$8 sps:$4 sm:$0xff]   ;;  %v217_v6 = vld [vmem:[#allocation3 + $0x24] ss:$8 sps:$4 sm:$0xff]  }
  0x15   :  { %98 = vmatpush1.bf16.msra.mxu0 %v213_v3  ;;  %v219_v7 = vld [vmem:[#allocation3 + $0x20] ss:$8 sps:$4 sm:$0xff]   ;;  %v220_v8 = vld [vmem:[#allocation3 + $0x34] ss:$8 sps:$4 sm:$0xff]   ;;  %v222_v9 = vld [vmem:[#allocation3 + $0x30] ss:$8 sps:$4 sm:$0xff]  }
  0x16   :  { %99 = vmatprep.subr.bf16.mxu0 %v214_v4  ;;  %v43_v11 = vld [vmem:[%s304_s0 + $0x8] sm:$0xff]  ;;  %v158_v16 = vshrl.u32 %v157_v13, 7  ;;  %v155_v25 = vld [vmem:[%s306_s2] sm:$0x3]  ;;  %vm183_vm1 = vcmask 1043456   ;;  %vm184_vm2 = vcmask 523268  }
  0x17   :  { %v44_v12 = vpack.c.bf16 %v43_v11, %v42_v10  ;;  %vm185_vm3 = vmor %vm184_vm2, %vm183_vm1 }
  0x18   :  { %v159_v22 = vsub.s32 0, %v158_v16  ;;  %v163_v23 = vsub.s32 1, %v158_v16 }
  0x19   :  { %100 = vmatpush1.bf16.msra.mxu0 %v216_v5 }
  0x1a   :  { %101 = vmatprep.subr.bf16.mxu0 %v217_v6  ;;  %v39_v14 = vld [vmem:[#allocation2 + $0x8] sm:$0xff]  ;;  %v41_v18 = vld [vmem:[#allocation2 + $0x18] sm:$0xff]  ;;  %v160_v26 = vrot.slane %v155_v25, %v159_v22  ;;  %v164_v27 = vrot.slane %v155_v25, %v163_v23 }
  0x1d   :  { %102 = vmatpush1.bf16.msra.mxu0 %v219_v7 }
  0x1e   :  { %103 = vmatprep.subr.bf16.mxu0 %v220_v8 }
  0x21   :  { %104 = vmatpush1.bf16.msra.mxu0 %v222_v9 }
  0x24   :  { %201 = vmatmul.mubr.msk.bf16.vlgmr.msra.gmra.mrb[0].mxu0 %vm34_vm0, %v44_v12 }
  0xf7   :  { %v131_v15 = vpop.f32.mrb[0].mxu0 }
  0xf8   :  { %v133_v17 = vpop.f32.mrb[1].mxu0  ;;  %v167_v29 = vadd.f32 %v160_v26, %v131_v15 }
  0xf9   :  { %v141_v19 = vadd.f32 %v133_v17, %v39_v14  ;;  %v135_v20 = vpop.f32.mrb[2].mxu0 }
  0xfa   :  { %v137_v21 = vpop.f32.mrb[3].mxu0  ;;  %v169_v33 = vadd.f32 %v160_v26, %v135_v20 }
  0xfb   :  { %145 = vst.msk [vmem:[#allocation2 + $0x8] sm:$0xff] %vm34_vm0, %v141_v19  ;;  %v143_v24 = vadd.f32 %v137_v21, %v41_v18 }
  0xfd   :  { %147 = vst.msk [vmem:[#allocation2 + $0x18] sm:$0xff] %vm34_vm0, %v143_v24 }
 0x102   :  { %v152_v28 = vld [vmem:[#allocation2 + $0x8] sm:$0xff] }
 0x103   :  { %v168_v30 = vadd.f32 %v164_v27, %v152_v28 }
 0x104   :  { %v154_v31 = vld [vmem:[#allocation2 + $0x18] sm:$0xff] }
 0x105   :  { %v204_v32 = vpack.c.bf16 %v168_v30, %v167_v29  ;;  %v170_v34 = vadd.f32 %v164_v27, %v154_v31 }
 0x107   :  { %186 = vst.msk [vmem:[%s307_s3] sm:$0xff] %vm185_vm3, %v204_v32  ;;  %v205_v35 = vpack.c.bf16 %v170_v34, %v169_v33 }
 0x109   :  { %187 = vst.msk [vmem:[%s307_s3 + $0x8] sm:$0xff] %vm185_vm3, %v205_v35 }
 0x10a   :  { %192 = vsyncpa [#allocation4], 1 }

// kernel: transformer_forward.7
= control target key start
LH: loop header
LB: loop body
LE: loop exit
PB: predicated region body
PF: predicated region fallthrough
CT: control target
= control target key end

     0   :  { %vm28_vm0 = vcmask 523264   ;;  %v227_v0 = vmov 0.0   ;;  %vm228_vm1 = vmmov 0   ;;  %s311_s1 = inlined_call_operand.vmem [shape: bf16[64,64], index: 1, kind: input, shape index: {}]   ;;  %s312_s0 = inlined_call_operand.vmem [shape: bf16[16,64], index: 0, kind: input, shape index: {}]   ;;  %s313_s2 = inlined_call_operand.vmem [shape: f32[1,64], index: 2, kind: input, shape index: {}]   ;;  %s314_s3 = inlined_call_operand.vmem [shape: f32[16,64], index: 3, kind: input, shape index: {}]   ;;  %s315_s4 = inlined_call_operand.vmem [shape: f32[1,64], index: 4, kind: input, shape index: {}]   ;;  %s316_s5 = inlined_call_operand.vmem [shape: f32[1,64], index: 5, kind: input, shape index: {}]   ;;  %s317_s6 = inlined_call_operand.vmem [shape: f32[16,64], index: 6, kind: output, shape index: {}]  }
   0x1   :  { %204 = vmatprep.subr.bf16.mxu0 %v227_v0  ;;  %v218_v1 = vld [vmem:[%s311_s1] sm:$0xff]   ;;  %212 = vmatprep.mubr.msk.bf16.mxu0 %vm228_vm1, %v227_v0  ;;  %29 = vst.msk [vmem:[#allocation2] sm:$0xff] %vm28_vm0, %v227_v0  ;;  %30 = vst.msk [vmem:[#allocation2 + $0x8] sm:$0xff] %vm28_vm0, %v227_v0  ;;  %v219_v2 = vld [vmem:[%s311_s1 + $0x8] sm:$0xff]  }
   0x2   :  { %205 = vmatpush3.bf16.msra.mxu0 %v218_v1  ;;  %v220_v3 = vld [vmem:[%s311_s1 + $0x10] sm:$0xff]   ;;  %v221_v4 = vld [vmem:[%s311_s1 + $0x18] sm:$0xff]   ;;  %v222_v5 = vld [vmem:[%s312_s0] sm:$0xff]  }
   0x3   :  { %206 = vmatprep.subr.bf16.mxu0 %v227_v0  ;;  %v196_v14 = vld [vmem:[%s313_s2] ss:$0 sm:$0xff]  ;;  %v136_v19 = vld [vmem:[%s314_s3 + $0x8] sm:$0xff] }
   0x4   :  { %v135_v16 = vld [vmem:[%s314_s3] sm:$0xff] }
   0x5   :  { %v197_v42 = vld [vmem:[%s315_s4] ss:$0 sm:$0xff] }
   0x6   :  { %207 = vmatpush3.bf16.msra.mxu0 %v219_v2  ;;  %v198_v44 = vld [vmem:[%s316_s5] ss:$0 sm:$0xff] }
   0x7   :  { %208 = vmatprep.subr.bf16.mxu0 %v227_v0 }
   0x8   :  { %v31_v6 = vld [vmem:[#allocation2] sm:$0xff]  ;;  %v32_v8 = vld [vmem:[#allocation2 + $0x8] sm:$0xff] }
   0xa   :  { %209 = vmatpush3.bf16.msra.mxu0 %v220_v3 }
   0xb   :  { %210 = vmatprep.subr.bf16.mxu0 %v227_v0 }
   0xe   :  { %211 = vmatpush3.bf16.msra.mxu0 %v221_v4 }
  0x11   :  { %213 = vmatmul.mubr.msk.bf16.vlgmr.msra.gmra.mrb[0].mxu0 %vm28_vm0, %v222_v5 }
  0xe4   :  { %v110_v7 = vpop.f32.mrb[0].mxu0 }
  0xe5   :  { %v117_v9 = vadd.f32 %v110_v7, %v31_v6  ;;  %v214_v10 = vpop.f32.mrb[1].mxu0 }
  0xe6   :  { %v113_v11 = vpop.f32.mrb[2].mxu0 }
  0xe7   :  { %119 = vst.msk [vmem:[#allocation2] sm:$0xff] %vm28_vm0, %v117_v9  ;;  %v118_v12 = vadd.f32 %v113_v11, %v32_v8  ;;  %v215_v13 = vpop.f32.mrb[3].mxu0 }
  0xe9   :  { %120 = vst.msk [vmem:[#allocation2 + $0x8] sm:$0xff] %vm28_vm0, %v118_v12 }
  0xee   :  { %v124_v15 = vld [vmem:[#allocation2] sm:$0xff] }
  0xef   :  { %v133_v17 = vadd.f32 %v196_v14, %v124_v15 }
  0xf0   :  { %v125_v18 = vld [vmem:[#allocation2 + $0x8] sm:$0xff] }
  0xf1   :  { %v137_v20 = vadd.f32 %v135_v16, %v133_v17  ;;  %v134_v21 = vadd.f32 %v196_v14, %v125_v18 }
  0xf3   :  { %v139_v22 = vsel %vm28_vm0, %v137_v20, 0.0  ;;  %v138_v23 = vadd.f32 %v136_v19, %v134_v21 }
  0xf4   :  { %140 = vadd.xlane.f32.xlu0 %v139_v22 }
  0xf5   :  { %v142_v24 = vsel %vm28_vm0, %v138_v23, 0.0 }
  0xf8   :  { %143 = vadd.xlane.f32.xlu0 %v142_v24 }
 0x181   :  { %v141_v25 = vpop.xlane.xlu0 %140 }
 0x182   :  { %v146_v26 = vmul.f32 0.015625, %v141_v25 }
 0x184   :  { %v148_v27 = vsub.f32 %v137_v20, %v146_v26 }
 0x185   :  { %v144_v28 = vpop.xlane.xlu0 %143 }
 0x186   :  { %v147_v29 = vmul.f32 0.015625, %v144_v28  ;;  %v150_v30 = vmul.f32 %v148_v27, %v148_v27 }
 0x188   :  { %v149_v31 = vsub.f32 %v138_v23, %v147_v29  ;;  %v152_v32 = vsel %vm28_vm0, %v150_v30, 0.0 }
 0x189   :  { %153 = vadd.xlane.f32.xlu1 %v152_v32 }
 0x18a   :  { %v151_v33 = vmul.f32 %v149_v31, %v149_v31 }
 0x18c   :  { %v155_v34 = vsel %vm28_vm0, %v151_v33, 0.0 }
 0x18d   :  { %156 = vadd.xlane.f32.xlu1 %v155_v34 }
 0x216   :  { %v154_v35 = vpop.xlane.xlu1 %153 }
 0x217   :  { %v158_v36 = vmul.f32 0.015625, %v154_v35 }
 0x219   :  { %v160_v37 = vadd.f32 1e-05, %v158_v36 }
 0x21a   :  { %v157_v38 = vpop.xlane.xlu1 %156 }
 0x21b   :  { %223 = vrsqrt.f32 %v160_v37  ;;  %v159_v39 = vmul.f32 0.015625, %v157_v38 }
 0x21d   :  { %v161_v40 = vadd.f32 1e-05, %v159_v39 }
 0x21f   :  { %225 = vrsqrt.f32 %v161_v40 }
 0x225   :  { %v224_v41 = vpop.eup %223 }
 0x226   :  { %v164_v43 = vmul.f32 %v224_v41, %v148_v27 }
 0x228   :  { %v173_v45 = vmul.f32 %v197_v42, %v164_v43 }
 0x229   :  { %v226_v46 = vpop.eup %225 }
 0x22a   :  { %v182_v47 = vadd.f32 %v198_v44, %v173_v45  ;;  %v165_v48 = vmul.f32 %v226_v46, %v149_v31 }
 0x22c   :  { %184 = vst.msk [vmem:[%s317_s6] sm:$0xff] %vm28_vm0, %v182_v47  ;;  %v174_v49 = vmul.f32 %v197_v42, %v165_v48 }
 0x22e   :  { %v183_v50 = vadd.f32 %v198_v44, %v174_v49 }
 0x230   :  { %185 = vst.msk [vmem:[%s317_s6 + $0x8] sm:$0xff] %vm28_vm0, %v183_v50 }

// kernel: transformer_forward.6
= control target key start
LH: loop header
LB: loop body
LE: loop exit
PB: predicated region body
PF: predicated region fallthrough
CT: control target
= control target key end

     0   :  { %s785_s6 = smov 0   ;;  %s883_s0 = inlined_call_operand.vmem [shape: bf16[16,192], index: 0, kind: input, shape index: {}]   ;;  %s884_s1 = inlined_call_operand.vmem [shape: bf16[16,64], index: 1, kind: output, shape index: {}]  }
   0x1 LB: > { %s638_s7 = sadd.s32 4294967295, %s764_s6   ;;  %p642_p0 = scmp.ge.s32.totalorder %s764_s6, 1  ;;  %s764_s6 = sphi %s785_s6, %s11_s6  }
   0x2   : > { %p87_p1 = scmp.lt.s32.totalorder %s764_s6, 3 }
   0x4   : > { %p88_p2 = pnand %p642_p0, %p87_p1 }
   0x5   : > { %p106_p3 = scmp.lt.s32.totalorder (!%p88_p2), %s638_s7, 1  ;;  %v766_v0 = vmov (!%p88_p2), 0.0   ;;  %vm767_vm0 = vmmov (!%p88_p2), 0   ;;  %s768_s12 = smov (!%p88_p2), 112   ;;  %vm122_vm1 = vcmask (!%p88_p2), 130048   ;;  %vm170_vm2 = vcmask (!%p88_p2), 64512  }
   0x6   : > { %91 = sbr.rel (%p88_p2) target bundleno = 1558 (0x616), region = 24  ;;  %675 = vmatprep.subr.bf16.mxu0 (!%p88_p2), %v766_v0  ;;  %677 = vmatprep.mubr.msk.bf16.mxu0 (!%p88_p2), %vm767_vm0, %v766_v0  ;;  %s769_s13 = smov (!%p88_p2), 96   ;;  %vm188_vm3 = vcmask (!%p88_p2), 1043456   ;;  %vm578_vm4 = vcmask (!%p88_p2), 261120   ;;  %vm580_vm5 = vcmask (!%p88_p2), 392192   ;;  %vm583_vm6 = vcmask (!%p88_p2), 519168  }
   0x7   : > { %681 = vmatprep.subr.bf16.mxu1 (!%p88_p2), %v766_v0  ;;  %683 = vmatprep.mubr.msk.bf16.mxu1 (!%p88_p2), %vm767_vm0, %v766_v0  ;;  %s770_s14 = smov (!%p88_p2), 64   ;;  %s771_s15 = smov (!%p88_p2), 80  }
   0x8   : > { %s772_s16 = smov (!%p88_p2), 16   ;;  %s773_s17 = smov (!%p88_p2), 32  }
   0x9   : > { %s774_s18 = smov (!%p88_p2), 48  }
   0xd   : > { %s886_s7 = smov (!%p106_p3, %s638_s7), 1 }
   0xe   : > { %s658_s8 = sshll.u32 %s886_s7, 3  ;;  %s645_s19 = sshll.u32 %s886_s7, 2 }
   0xf   : > { %s110_s11 = scalar_lea.vmem %s883_s0, %s658_s8  ;;  %s114_s22 = scalar_lea.vmem %s884_s1, %s645_s19 }
  0x10   : > { %v116_v1 = vld [vmem:[%s110_s11] sm:$0xff] }
  0x11   : > { %v805_v2 = vcombine.low %v116_v1, %v116_v1  ;;  %v817_v11 = vcombine.high %v116_v1, %v116_v1 }
  0x13   : > { %120 = vrot.lane.b32.xlu0 %v805_v2, %s768_s12  ;;  %183 = vrot.lane.b32.xlu1 %v805_v2, %s769_s13 }
  0x17   : > { %234 = vrot.lane.b32.xlu1 %v805_v2, %s770_s14 }
  0x85   : > { %v121_v3 = vpop.permute.xlu0 %120  ;;  %v184_v12 = vpop.permute.xlu1 %183 }
  0x86   : > { %v127_v4 = vsel %vm122_vm1, %v121_v3, 0  ;;  %v190_v13 = vsel %vm188_vm3, %v184_v12, 0 }
  0x87   : > { %676 = vmatpush3.bf16.xpose.msra.mxu0 %v127_v4  ;;  %682 = vmatpush3.bf16.msra.mxu1 %v190_v13 }
  0x88   : > { %693 = vmatprep.subr.bf16.mxu0 %v766_v0  ;;  %687 = vmatprep.subr.bf16.mxu1 %v766_v0 }
  0x89   : > { %v235_v19 = vpop.permute.xlu1 %234 }
  0x8a   : > { %v240_v25 = vsel %vm122_vm1, %v235_v19, 0 }
  0x8e   : > { %678 = vmatmul.mubr.msk.bf16.vlgmr.msra.gmra.mrb[0].mxu0 %vm122_vm1, %v116_v1 }
  0x8f   : > { %695 = vmatprep.mubr.msk.bf16.mxu0 %vm767_vm0, %v766_v0 }
 0x161   : > { %v163_v5 = vpop.f32.mrb[0].mxu0 }
 0x162   : > { %v169_v6 = vmul.f32 0.25, %v163_v5  ;;  %v679_v7 = vpop.f32.mrb[1].mxu0 }
 0x163   : > { %v166_v8 = vpop.f32.mrb[2].mxu0 }
 0x164   : > { %v680_v9 = vpop.f32.mrb[3].mxu0  ;;  %v171_v10 = vsel %vm170_vm2, %v169_v6, -inf }
 0x165   : > { %172 = vmax.xlane.f32.xlu0 %v171_v10 }
 0x17b   : > { %456 = vrot.lane.b32.xlu0 %v817_v11, %s769_s13 }
 0x1f2   : > { %v173_v14 = vpop.xlane.xlu0 %172 }
 0x1f3   : > { %v174_v15 = vsub.f32 %v169_v6, %v173_v14 }
 0x1f5   : > { %v175_v16 = vmul.f32 1.442695, %v174_v15  ;;  %v412_v15 = vsel %vm188_vm3, %v817_v11, 0 }
 0x1f6   : > { %v457_v28 = vpop.permute.xlu0 %456 }
 0x1f7   : > { %742 = vpow2.f32 %v175_v16  ;;  %v462_v30 = vsel %vm122_vm1, %v457_v28, 0 }
 0x201   : > { %v743_v17 = vpop.eup %742 }
 0x202   : > { %v177_v18 = vsel %vm170_vm2, %v743_v17, 0.0 }
 0x203   : > { %178 = vadd.xlane.f32.xlu1 %v177_v18 }
 0x214   : > { %232 = vrot.lane.b32.xlu1 %v805_v2, %s771_s15 }
 0x218   : > { %345 = vrot.lane.b32.xlu1 %v805_v2, %s772_s16 }
 0x21c   : > { %343 = vrot.lane.b32.xlu1 %v805_v2, %s773_s17 }
 0x220   : > { %454 = vrot.lane.b32.xlu1 %v817_v11, %s768_s12 }
 0x290   : > { %v179_v20 = vpop.xlane.xlu1 %178 }
 0x291   : > { %744 = vrcp.f32 %v179_v20 }
 0x294   : > { %v233_v23 = vpop.permute.xlu1 %232 }
 0x298   : > { %v346_v26 = vpop.permute.xlu1 %345 }
 0x299   : > { %v351_v27 = vsel %vm122_vm1, %v346_v26, 0 }
 0x29b   : > { %v745_v21 = vpop.eup %744 }
 0x29c   : > { %v181_v22 = vmul.f32 %v745_v21, %v743_v17  ;;  %v344_v29 = vpop.permute.xlu1 %343 }
 0x29e   : > { %v182_v24 = vpack.c.bf16 %v181_v22, %v181_v22 }
 0x2a0   : > { %684 = vmatmul.mubr.msk.bf16.vlgmr.msra.gmra.mrb[0].mxu1 %vm170_vm2, %v182_v24  ;;  %v455_v31 = vpop.permute.xlu1 %454 }
 0x2a1   : > { %688 = vmatpush3.bf16.xpose.msra.mxu1 %v240_v25  ;;  %689 = vmatprep.mubr.msk.bf16.mxu1 %vm767_vm0, %v766_v0 }
 0x2a2   : > { %699 = vmatprep.subr.bf16.mxu1 %v766_v0 }
 0x2a8   : > { %690 = vmatmul.mubr.msk.bf16.vlgmr.msra.gmra.mrb[4].mxu1 %vm122_vm1, %v233_v23 }
 0x2a9   : > { %700 = vmatpush3.bf16.xpose.msra.mxu1 %v351_v27  ;;  %701 = vmatprep.mubr.msk.bf16.mxu1 %vm767_vm0, %v766_v0 }
 0x2aa   : > { %711 = vmatprep.subr.bf16.mxu1 %v766_v0 }
 0x2b0   : > { %702 = vmatmul.mubr.msk.bf16.vlgmr.msra.gmra.mrb[8].mxu1 %vm122_vm1, %v344_v29 }
 0x2b1   : > { %712 = vmatpush3.bf16.xpose.msra.mxu1 %v462_v30  ;;  %713 = vmatprep.mubr.msk.bf16.mxu1 %vm767_vm0, %v766_v0 }
 0x2b8   : > { %714 = vmatmul.mubr.msk.bf16.vlgmr.msra.gmra.mrb[12].mxu1 %vm122_vm1, %v455_v31 }
 0x373   : > { %v846_v32 = vpop.f32.mrb[0].mxu1 }
 0x374   : > { %v685_v33 = vpop.f32.mrb[1].mxu1 }
 0x375   : > { %v229_v34 = vpop.f32.mrb[2].mxu1 }
 0x376   : > { %v686_v35 = vpop.f32.mrb[3].mxu1 }
 0x37b   : > { %v276_v36 = vpop.f32.mrb[4].mxu1 }
 0x37c   : > { %v282_v37 = vmul.f32 0.25, %v276_v36  ;;  %v691_v38 = vpop.f32.mrb[5].mxu1 }
 0x37d   : > { %v279_v39 = vpop.f32.mrb[6].mxu1 }
 0x37e   : > { %v692_v40 = vpop.f32.mrb[7].mxu1  ;;  %v283_v41 = vsel %vm170_vm2, %v282_v37, -inf }
 0x37f   : > { %284 = vmax.xlane.f32.xlu1 %v283_v41 }
 0x383   : > { %v387_v42 = vpop.f32.mrb[8].mxu1 }
 0x384   : > { %v393_v43 = vmul.f32 0.25, %v387_v42  ;;  %v703_v44 = vpop.f32.mrb[9].mxu1 }
 0x385   : > { %v390_v45 = vpop.f32.mrb[10].mxu1 }
 0x386   : > { %v704_v46 = vpop.f32.mrb[11].mxu1  ;;  %v394_v47 = vsel %vm170_vm2, %v393_v43, -inf }
 0x387   : > { %395 = vmax.xlane.f32.xlu0 %v394_v47 }
 0x38b   : > { %v498_v48 = vpop.f32.mrb[12].mxu1 }
 0x38c   : > { %v504_v49 = vmul.f32 0.25, %v498_v48  ;;  %v715_v50 = vpop.f32.mrb[13].mxu1 }
 0x38d   : > { %v501_v51 = vpop.f32.mrb[14].mxu1 }
 0x38e   : > { %v505_v52 = vsel %vm170_vm2, %v504_v49, -inf  ;;  %v716_v53 = vpop.f32.mrb[15].mxu1 }
 0x38f   : > { %506 = vmax.xlane.f32.xlu1 %v505_v52 }
 0x40c   : > { %v285_v54 = vpop.xlane.xlu1 %284 }
 0x40d   : > { %v286_v55 = vsub.f32 %v282_v37, %v285_v54 }
 0x40f   : > { %v287_v56 = vmul.f32 1.442695, %v286_v55 }
 0x411   : > { %746 = vpow2.f32 %v287_v56 }
 0x414   : > { %v396_v57 = vpop.xlane.xlu0 %395 }
 0x415   : > { %v397_v58 = vsub.f32 %v393_v43, %v396_v57 }
 0x417   : > { %v398_v59 = vmul.f32 1.442695, %v397_v58 }
 0x419   : > { %748 = vpow2.f32 %v398_v59 }
 0x41b   : > { %v747_v60 = vpop.eup %746 }
 0x41c   : > { %v507_v61 = vpop.xlane.xlu1 %506  ;;  %v289_v62 = vsel %vm170_vm2, %v747_v60, 0.0 }
 0x41d   : > { %v508_v63 = vsub.f32 %v504_v49, %v507_v61  ;;  %290 = vadd.xlane.f32.xlu1 %v289_v62 }
 0x41f   : > { %v509_v1 = vmul.f32 1.442695, %v508_v63 }
 0x421   : > { %750 = vpow2.f32 %v509_v1 }
 0x423   : > { %v749_v3 = vpop.eup %748 }
 0x424   : > { %v400_v4 = vsel %vm170_vm2, %v749_v3, 0.0 }
 0x425   : > { %401 = vadd.xlane.f32.xlu1 %v400_v4 }
 0x42b   : > { %v751_v5 = vpop.eup %750 }
 0x42c   : > { %v511_v6 = vsel %vm170_vm2, %v751_v5, 0.0 }
 0x42d   : > { %512 = vadd.xlane.f32.xlu0 %v511_v6 }
 0x436   : > { %295 = vrot.lane.b32.xlu1 %v805_v2, %s774_s18 }
 0x443   : > { %517 = vrot.lane.b32.xlu0 %v817_v11, %s771_s15 }
 0x4aa   : > { %v291_v7 = vpop.xlane.xlu1 %290 }
 0x4ab   : > { %752 = vrcp.f32 %v291_v7 }
 0x4b2   : > { %v402_v8 = vpop.xlane.xlu1 %401 }
 0x4b3   : > { %754 = vrcp.f32 %v402_v8 }
 0x4b5   : > { %v753_v9 = vpop.eup %752 }
 0x4b6   : > { %v293_v10 = vmul.f32 %v753_v9, %v747_v60  ;;  %v296_v12 = vpop.permute.xlu1 %295 }
 0x4b7   : > { %v301_v13 = vsel %vm188_vm3, %v296_v12, 0 }
 0x4b8   : > { %694 = vmatpush3.bf16.msra.mxu0 %v301_v13  ;;  %v294_v14 = vpack.c.bf16 %v293_v10, %v293_v10 }
 0x4b9   : > { %705 = vmatprep.subr.bf16.mxu0 %v766_v0 }
 0x4ba   : > { %v513_v2 = vpop.xlane.xlu0 %512 }
 0x4bb   : > { %756 = vrcp.f32 %v513_v2  ;;  %696 = vmatmul.mubr.msk.bf16.vlgmr.msra.gmra.mrb[4].mxu0 %vm170_vm2, %v294_v14 }
 0x4bc   : > { %706 = vmatpush3.bf16.msra.mxu0 %v412_v15  ;;  %707 = vmatprep.mubr.msk.bf16.mxu0 %vm767_vm0, %v766_v0 }
 0x4bd   : > { %v755_v16 = vpop.eup %754  ;;  %717 = vmatprep.subr.bf16.mxu0 %v766_v0 }
 0x4be   : > { %v404_v17 = vmul.f32 %v755_v16, %v749_v3  ;;  %v518_v18 = vpop.permute.xlu0 %517 }
 0x4bf   : > { %v523_v20 = vsel %vm188_vm3, %v518_v18, 0 }
 0x4c0   : > { %v405_v19 = vpack.c.bf16 %v404_v17, %v404_v17 }
 0x4c3   : > { %708 = vmatmul.mubr.msk.bf16.vlgmr.msra.gmra.mrb[8].mxu0 %vm170_vm2, %v405_v19 }
 0x4c4   : > { %718 = vmatpush3.bf16.msra.mxu0 %v523_v20  ;;  %719 = vmatprep.mubr.msk.bf16.mxu0 %vm767_vm0, %v766_v0 }
 0x4c5   : > { %v757_v11 = vpop.eup %756 }
 0x4c6   : > { %v515_v21 = vmul.f32 %v757_v11, %v751_v5 }
 0x4c8   : > { %v516_v22 = vpack.c.bf16 %v515_v21, %v515_v21 }
 0x4cb   : > { %720 = vmatmul.mubr.msk.bf16.vlgmr.msra.gmra.mrb[12].mxu0 %vm170_vm2, %v516_v22 }
 0x58e   : > { %v337_v23 = vpop.f32.mrb[4].mxu0 }
 0x58f   : > { %566 = vrot.lane.b32.xlu1 %v337_v23, %s772_s16  ;;  %v697_v24 = vpop.f32.mrb[5].mxu0 }
 0x590   : > { %v340_v25 = vpop.f32.mrb[6].mxu0 }
 0x591   : > { %v698_v26 = vpop.f32.mrb[7].mxu0 }
 0x596   : > { %v448_v27 = vpop.f32.mrb[8].mxu0 }
 0x597   : > { %570 = vrot.lane.b32.xlu1 %v448_v27, %s773_s17  ;;  %v709_v28 = vpop.f32.mrb[9].mxu0 }
 0x598   : > { %v451_v29 = vpop.f32.mrb[10].mxu0 }
 0x599   : > { %v710_v30 = vpop.f32.mrb[11].mxu0 }
 0x59e   : > { %v559_v31 = vpop.f32.mrb[12].mxu0 }
 0x59f   : > { %574 = vrot.lane.b32.xlu0 %v559_v31, %s774_s18  ;;  %v721_v0 = vpop.f32.mrb[13].mxu0 }
 0x5a0   : > { %v562_v33 = vpop.f32.mrb[14].mxu0 }
 0x5a1   : > { %v722_v34 = vpop.f32.mrb[15].mxu0 }
 0x601   : > { %v567_v35 = vpop.permute.xlu1 %566 }
 0x602   : > { %v577_v37 = vsel %vm122_vm1, %v846_v32, %v567_v35 }
 0x609   : > { %v571_v36 = vpop.permute.xlu1 %570 }
 0x60a   : > { %v579_v38 = vsel %vm578_vm4, %v577_v37, %v571_v36 }
 0x611   : > { %v575_v39 = vpop.permute.xlu0 %574 }
 0x612   : > { %v581_v40 = vsel %vm580_vm5, %v579_v38, %v575_v39 }
 0x613   : > { %v582_v41 = vpack.c.bf16 %v581_v40, %v581_v40 }
 0x615   : > { %584 = vst.msk [vmem:[%s114_s22] sm:$0xf] %vm583_vm6, %v582_v41 }
 0x616 PF: > { %s11_s6 = sadd.s32 1, %s764_s6  }
 0x617   : > { %p8_p4 = scmp.ge.s32.totalorder %s11_s6, 4  }
 0x619   :  { %10 = sbr.rel (!%p8_p4) target bundleno = 1 (0x1), region = 54 }

// kernel: transformer_forward.8
= control target key start
LH: loop header
LB: loop body
LE: loop exit
PB: predicated region body
PF: predicated region fallthrough
CT: control target
= control target key end

     0   :  { %v195_v0 = vmov 0.0   ;;  %vm196_vm0 = vmmov 0   ;;  %vm58_vm1 = vcmask 523264   ;;  %s241_s1 = inlined_call_operand.vmem [shape: bf16[64,128], index: 1, kind: input, shape index: {}]   ;;  %s242_s0 = inlined_call_operand.vmem [shape: f32[16,64], index: 0, kind: input, shape index: {}]   ;;  %s243_s2 = inlined_call_operand.vmem [shape: f32[1,128], index: 2, kind: input, shape index: {}]   ;;  %s244_s3 = inlined_call_operand.vmem [shape: bf16[16,128], index: 3, kind: output, shape index: {}]  }
   0x1   :  { %173 = vmatprep.subr.bf16.mxu0 %v195_v0  ;;  %v187_v1 = vld [vmem:[%s241_s1] sm:$0xff]   ;;  %181 = vmatprep.mubr.msk.bf16.mxu0 %vm196_vm0, %v195_v0  ;;  %v188_v2 = vld [vmem:[%s241_s1 + $0x8] sm:$0xff]   ;;  %v189_v3 = vld [vmem:[%s241_s1 + $0x10] sm:$0xff]  }
   0x2   :  { %174 = vmatpush3.bf16.msra.mxu0 %v187_v1  ;;  %v190_v4 = vld [vmem:[%s241_s1 + $0x18] sm:$0xff]   ;;  %v23_v5 = vld [vmem:[%s242_s0] sm:$0xff]  ;;  %v24_v6 = vld [vmem:[%s242_s0 + $0x8] sm:$0xff] }
   0x3   :  { %175 = vmatprep.subr.bf16.mxu0 %v195_v0  ;;  %v25_v7 = vpack.c.bf16 %v24_v6, %v23_v5  ;;  %v158_v8 = vld [vmem:[%s243_s2] ss:$0 sm:$0xff] }
   0x6   :  { %176 = vmatpush3.bf16.msra.mxu0 %v188_v2 }
   0x7   :  { %177 = vmatprep.subr.bf16.mxu0 %v195_v0 }
   0xa   :  { %178 = vmatpush3.bf16.msra.mxu0 %v189_v3 }
   0xb   :  { %179 = vmatprep.subr.bf16.mxu0 %v195_v0 }
   0xe   :  { %180 = vmatpush3.bf16.msra.mxu0 %v190_v4 }
  0x11   :  { %182 = vmatmul.mubr.msk.bf16.vlgmr.msra.gmra.mrb[0].mxu0 %vm58_vm1, %v25_v7 }
  0xe4   :  { %v96_v9 = vpop.f32.mrb[0].mxu0 }
  0xe5   :  { %v119_v10 = vadd.f32 %v158_v8, %v96_v9  ;;  %v183_v11 = vpop.f32.mrb[1].mxu0 }
  0xe6   :  { %v99_v12 = vpop.f32.mrb[2].mxu0 }
  0xe7   :  { %v121_v13 = vmul.f32 %v119_v10, %v119_v10  ;;  %v120_v14 = vadd.f32 %v158_v8, %v99_v12  ;;  %v184_v15 = vpop.f32.mrb[3].mxu0 }
  0xe9   :  { %v123_v16 = vmul.f32 %v121_v13, %v119_v10  ;;  %v122_v17 = vmul.f32 %v120_v14, %v120_v14 }
  0xeb   :  { %v125_v18 = vmul.f32 0.044715, %v123_v16  ;;  %v124_v19 = vmul.f32 %v122_v17, %v120_v14 }
  0xed   :  { %v127_v20 = vadd.f32 %v125_v18, %v119_v10  ;;  %v126_v21 = vmul.f32 0.044715, %v124_v19 }
  0xef   :  { %v129_v22 = vmul.f32 0.7978846, %v127_v20  ;;  %v128_v23 = vadd.f32 %v126_v21, %v120_v14 }
  0xf1   :  { %191 = vtanh.f32 %v129_v22  ;;  %v130_v24 = vmul.f32 0.7978846, %v128_v23 }
  0xf3   :  { %193 = vtanh.f32 %v130_v24 }
  0xfb   :  { %v192_v25 = vpop.eup %191 }
  0xfc   :  { %v133_v26 = vadd.f32 1.0, %v192_v25 }
  0xfd   :  { %v194_v27 = vpop.eup %193 }
  0xfe   :  { %v135_v28 = vmul.f32 0.5, %v133_v26  ;;  %v134_v29 = vadd.f32 1.0, %v194_v27 }
 0x100   :  { %v136_v30 = vmul.f32 0.5, %v134_v29  ;;  %v137_v31 = vmul.f32 %v135_v28, %v119_v10 }
 0x102   :  { %v138_v32 = vmul.f32 %v136_v30, %v120_v14 }
 0x104   :  { %v166_v33 = vpack.c.bf16 %v138_v32, %v137_v31 }
 0x106   :  { %167 = vst [vmem:[%s244_s3] sm:$0xff] %v166_v33  }

// kernel: transformer_forward.9
= control target key start
LH: loop header
LB: loop body
LE: loop exit
PB: predicated region body
PF: predicated region fallthrough
CT: control target
= control target key end

     0   :  { %v316_v1 = vmov 0.0   ;;  %vm317_vm0 = vmmov 0   ;;  %vm29_vm1 = vcmask 523264   ;;  %s420_s0 = inlined_call_operand.vmem [shape: bf16[16,128], index: 0, kind: input, shape index: {}]   ;;  %s421_s1 = inlined_call_operand.vmem [shape: bf16[128,64], index: 1, kind: input, shape index: {}]   ;;  %s422_s2 = inlined_call_operand.vmem [shape: f32[1,64], index: 2, kind: input, shape index: {}]   ;;  %s423_s3 = inlined_call_operand.vmem [shape: f32[16,64], index: 3, kind: input, shape index: {}]   ;;  %s424_s4 = inlined_call_operand.vmem [shape: f32[1,64], index: 4, kind: input, shape index: {}]   ;;  %s425_s5 = inlined_call_operand.vmem [shape: f32[1,64], index: 5, kind: input, shape index: {}]   ;;  %s426_s6 = inlined_call_operand.hbm [shape: f32[16,64], index: 6, kind: output, shape index: {}]  }
   0x1   :  { %v279_v0 = vld [vmem:[%s421_s1] sm:$0xff]   ;;  %254 = vmatprep.subr.bf16.mxu0 %v316_v1  ;;  %v280_v2 = vld [vmem:[%s421_s1 + $0x8] sm:$0xff]   ;;  %270 = vmatprep.mubr.msk.bf16.mxu0 %vm317_vm0, %v316_v1  ;;  %30 = vst.msk [vmem:[#allocation2] sm:$0xff] %vm29_vm1, %v316_v1  ;;  %31 = vst.msk [vmem:[#allocation2 + $0x8] sm:$0xff] %vm29_vm1, %v316_v1 }
   0x2   :  { %255 = vmatpush3.bf16.msra.mxu0 %v279_v0  ;;  %v281_v3 = vld [vmem:[%s421_s1 + $0x10] sm:$0xff]  }
   0x3   :  { %256 = vmatprep.subr.bf16.mxu0 %v316_v1 }
   0x6   :  { %257 = vmatpush3.bf16.msra.mxu0 %v280_v2 }
   0x7   :  { %258 = vmatprep.subr.bf16.mxu0 %v316_v1 }
   0x8   :  { %11 = vsyncpa [#allocation4], 0  ;;  %v282_v4 = vld [vmem:[%s421_s1 + $0x18] sm:$0xff]   ;;  %v283_v5 = vld [vmem:[%s421_s1 + $0x20] sm:$0xff]   ;;  %s318_s21 = smov [#allocation3]  }
   0x9   :  { %v284_v6 = vld [vmem:[%s421_s1 + $0x28] sm:$0xff]   ;;  %v285_v7 = vld [vmem:[%s421_s1 + $0x30] sm:$0xff]   ;;  %v286_v8 = vld [vmem:[%s421_s1 + $0x38] sm:$0xff]   ;;  %s222_s22 = sshll.u32 %s318_s21, 4  ;;  %s223_s22 = int_to_ptr.vmem [resolvable:$true] %s222_s22 }
   0xa   :  { %259 = vmatpush3.bf16.msra.mxu0 %v281_v3  ;;  %v287_v9 = vld [vmem:[%s420_s0] sm:$0xff]   ;;  %v33_v12 = vld [vmem:[#allocation2 + $0x8] sm:$0xff]  ;;  %s292_s23 = scalar_lea.vmem %s223_s22, 256  ;;  %p297_p1 = scmp.lt.s32.totalorder %s223_s22, %s223_s22 }
   0xb   :  { %260 = vmatprep.subr.bf16.mxu0 %v316_v1  ;;  %v32_v10 = vld [vmem:[#allocation2] sm:$0xff]  ;;  %v167_v23 = vld [vmem:[%s423_s3 + $0x8] sm:$0xff]  ;;  %p293_p0 = scmp.ne.s32.totalorder %s223_s22, %s292_s23  ;;  %p298_p2 = scmp.lt.s32.totalorder %s292_s23, %s292_s23 }
   0xc   :  { %v242_v18 = vld [vmem:[%s422_s2] ss:$0 sm:$0xff] }
   0xd   :  { %v166_v20 = vld [vmem:[%s423_s3] sm:$0xff]  ;;  %p299_p3 = por %p298_p2, %p297_p1 }
   0xe   :  { %261 = vmatpush3.bf16.msra.mxu0 %v282_v4  ;;  %v243_v46 = vld [vmem:[%s424_s4] ss:$0 sm:$0xff] }
   0xf   :  { %262 = vmatprep.subr.bf16.mxu0 %v316_v1  ;;  %v244_v48 = vld [vmem:[%s425_s5] ss:$0 sm:$0xff]  ;;  %p300_p4 = pnand %p299_p3, %p293_p0 }
  0x12   :  { %263 = vmatpush3.bf16.msra.mxu0 %v283_v5 }
  0x13   :  { %264 = vmatprep.subr.bf16.mxu0 %v316_v1 }
  0x16   :  { %265 = vmatpush3.bf16.msra.mxu0 %v284_v6 }
  0x17   :  { %266 = vmatprep.subr.bf16.mxu0 %v316_v1 }
  0x1a   :  { %267 = vmatpush3.bf16.msra.mxu0 %v285_v7 }
  0x1b   :  { %268 = vmatprep.subr.bf16.mxu0 %v316_v1 }
  0x1e   :  { %269 = vmatpush3.bf16.msra.mxu0 %v286_v8 }
  0x21   :  { %271 = vmatmul.mubr.bf16.vlgmr.msra.gmra.mrb[0].mxu0 %v287_v9 }
  0xf4   :  { %v140_v11 = vpop.f32.mrb[0].mxu0 }
  0xf5   :  { %v147_v13 = vadd.f32 %v140_v11, %v32_v10  ;;  %v272_v14 = vpop.f32.mrb[1].mxu0 }
  0xf6   :  { %v143_v15 = vpop.f32.mrb[2].mxu0 }
  0xf7   :  { %150 = vst.msk [vmem:[#allocation2] sm:$0xff] %vm29_vm1, %v147_v13  ;;  %v148_v16 = vadd.f32 %v143_v15, %v33_v12  ;;  %v273_v17 = vpop.f32.mrb[3].mxu0 }
  0xf9   :  { %151 = vst.msk [vmem:[#allocation2 + $0x8] sm:$0xff] %vm29_vm1, %v148_v16 }
  0xfe   :  { %v155_v19 = vld [vmem:[#allocation2] sm:$0xff] }
  0xff   :  { %v164_v21 = vadd.f32 %v242_v18, %v155_v19 }
 0x100   :  { %v156_v22 = vld [vmem:[#allocation2 + $0x8] sm:$0xff] }
 0x101   :  { %v168_v24 = vadd.f32 %v166_v20, %v164_v21  ;;  %v165_v25 = vadd.f32 %v242_v18, %v156_v22 }
 0x103   :  { %v170_v26 = vsel %vm29_vm1, %v168_v24, 0.0  ;;  %v169_v27 = vadd.f32 %v167_v23, %v165_v25 }
 0x104   :  { %171 = vadd.xlane.f32.xlu0 %v170_v26 }
 0x105   :  { %v173_v28 = vsel %vm29_vm1, %v169_v27, 0.0 }
 0x108   :  { %174 = vadd.xlane.f32.xlu0 %v173_v28 }
 0x191   :  { %v172_v29 = vpop.xlane.xlu0 %171 }
 0x192   :  { %v177_v30 = vmul.f32 0.015625, %v172_v29 }
 0x194   :  { %v179_v31 = vsub.f32 %v168_v24, %v177_v30 }
 0x195   :  { %v175_v32 = vpop.xlane.xlu0 %174 }
 0x196   :  { %v178_v33 = vmul.f32 0.015625, %v175_v32  ;;  %v181_v34 = vmul.f32 %v179_v31, %v179_v31 }
 0x198   :  { %v180_v35 = vsub.f32 %v169_v27, %v178_v33  ;;  %v183_v36 = vsel %vm29_vm1, %v181_v34, 0.0 }
 0x199   :  { %184 = vadd.xlane.f32.xlu1 %v183_v36 }
 0x19a   :  { %v182_v37 = vmul.f32 %v180_v35, %v180_v35 }
 0x19c   :  { %v186_v38 = vsel %vm29_vm1, %v182_v37, 0.0 }
 0x19d   :  { %187 = vadd.xlane.f32.xlu1 %v186_v38 }
 0x226   :  { %v185_v39 = vpop.xlane.xlu1 %184 }
 0x227   :  { %v189_v40 = vmul.f32 0.015625, %v185_v39 }
 0x229   :  { %v191_v41 = vadd.f32 1e-05, %v189_v40 }
 0x22a   :  { %v188_v42 = vpop.xlane.xlu1 %187 }
 0x22b   :  { %288 = vrsqrt.f32 %v191_v41  ;;  %v190_v43 = vmul.f32 0.015625, %v188_v42 }
 0x22d   :  { %v192_v44 = vadd.f32 1e-05, %v190_v43 }
 0x22f   :  { %290 = vrsqrt.f32 %v192_v44 }
 0x235   :  { %v289_v45 = vpop.eup %288 }
 0x236   :  { %v195_v47 = vmul.f32 %v289_v45, %v179_v31 }
 0x238   :  { %v204_v49 = vmul.f32 %v243_v46, %v195_v47 }
 0x239   :  { %v291_v50 = vpop.eup %290 }
 0x23a   :  { %v196_v51 = vmul.f32 %v291_v50, %v180_v35  ;;  %v213_v52 = vadd.f32 %v244_v48, %v204_v49 }
 0x23c   :  { %v205_v53 = vmul.f32 %v243_v46, %v196_v51  ;;  %215 = vst.msk [vmem:[#allocation3] sm:$0xff] %vm29_vm1, %v213_v52 }
 0x23e   :  { %v214_v54 = vadd.f32 %v244_v48, %v205_v53 }
 0x240   :  { %216 = vst.msk [vmem:[#allocation3 + $0x8] sm:$0xff] %vm29_vm1, %v214_v54 }
 0x241   :  { %303 = shalt.err (!%p300_p4)
}
 0x242   :  { %s304_s24 = scalar_lea.hbm %s426_s6, 256 }
 0x243   :  { %p305_p5 = scmp.ne.s32.totalorder %s426_s6, %s304_s24  ;;  %p308_p6 = scmp.lt.u32.totalorder %s304_s24, %s426_s6 }
 0x245   :  { %p310_p7 = pnand %p308_p6, %p305_p5 }
 0x247   :  { %313 = shalt.err (!%p310_p7)
}
 0x248   :  { %s319_s29 = smov 128   ;;  %s320_s30 = smov 8  }
 0x249   :  { %228 = dma.vmem_to_hbm [thread:$0]  %s223_s22, 256, %s426_s6, [#allocation4], %s319_s29, %s319_s29, %s320_s30  }
 0x24a   :  { %314 = dma.done.wait [#allocation4], 256  }
 0x24b   :  { %315 = vsyncadd [#allocation4], 4294967040 }
 0x24c   :  { %232 = vsyncpa [#allocation4], 1 }

</bundles_post_ra>
